<compile_context>
chip_gen: v5e
topology: v5e:2x2
jax: 0.10.0
libtpu: 0.0.40
codegen_flags: <defaults>
</compile_context>

<pallas_src>
import functools
import math

import jax
import jax.numpy as jnp
from jax.experimental import pallas as pl
from jax.experimental.pallas import tpu as pltpu


D_MODEL = 32
KEY_DIM = 8
N_HEAD = 2
HK = N_HEAD * KEY_DIM              # 16
KV = KEY_DIM + 1                   # per-head V width incl. the constant-1 lane
QKV_W = 2 * HK + N_HEAD * KV       # fused projection width (50)
LN_EPS = 1e-5
GROUP_LANES = 128                  # lane width of the grouped attention matmuls
MASK_NEG = -1e30


def _cdiv(a, b):
    return -(-a // b)


def _seqs_per_group(L):
    # sequences packed into one (R*L, R*L) block-diagonal attention matmul
    return max(1, GROUP_LANES // L)


def _bf16_softmax_default():
    """bf16 VPU/EUP exists on TPU v6e / v7x; keep f32 on v5e and older."""
    try:
        kind = jax.devices()[0].device_kind.lower()
    except Exception:
        return False
    return ("v6" in kind) or ("v7" in kind)


def _attention_kernel(x_ref, ln_w_ref, ln_b_ref, wqkv_ref, bqkv_ref,
                      wf_ref, bf_ref, mask_ref, o_ref, *, softmax_dtype):
    TB, L, D = x_ref.shape
    R = _seqs_per_group(L)
    GL = R * L                        # rows/cols of one block-diagonal score block
    G = (TB * L) // GL                # groups per head in this batch block
    rows = TB * L

    x = x_ref[...].reshape(rows, D)   # leading-dim merge only (no relayout)
    residual = x

    # ---- LayerNorm over the feature (last) dim ----
    mean = jnp.mean(x, axis=-1, keepdims=True)
    cen = x - mean
    var = jnp.mean(cen * cen, axis=-1, keepdims=True)
    xn = cen * jax.lax.rsqrt(var + LN_EPS)
    xn = xn * ln_w_ref[...] + ln_b_ref[...]              # ln params are (1, D)

    # ---- fused Q|K|V projection ----
    # column layout: [q_h0|q_h1 | k_h0|k_h1 | v_h0,1 | v_h1,1]; the 1/sqrt(key_dim)
    # scale is pre-folded into the Q columns, and each head's V block has an
    # extra constant-1 lane (zero weight column, bias 1) that the PV matmul
    # turns into the softmax row-sum.
    qkv = jnp.dot(xn, wqkv_ref[...],
                  preferred_element_type=jnp.float32) + bqkv_ref[...]

    # ---- fold heads into the grouped batch axis: G' = N_HEAD * G ----
    def per_head(col0, width):
        parts = [qkv[:, col0 + h * width: col0 + (h + 1) * width]
                 .reshape(G, GL, width) for h in range(N_HEAD)]
        return jnp.concatenate(parts, axis=0)            # (N_HEAD*G, GL, width)

    q = per_head(0, KEY_DIM)
    k = per_head(HK, KEY_DIM)
    v = per_head(2 * HK, KV)

    # ---- block-diagonal grouped attention, both heads in one pass ----
    # NOTE: 'gmd,gnd->gmn' leaves the K orientation to dot_general; the
    # transposed operand is only (GL, 8) per group, negligible next to softmax.
    s = jnp.einsum("gmd,gnd->gmn", q, k,
                   preferred_element_type=jnp.float32)   # (G', GL, GL)
    s = s + mask_ref[...]                                # hoisted additive mask
    s = s - jnp.max(s, axis=-1, keepdims=True)
    p = jnp.exp(s.astype(softmax_dtype))                 # bf16 EUP on v6e/v7x

    # PV matmul; trailing V lane is the constant 1 -> ov[..., KEY_DIM] is the
    # softmax denominator (free on the MXU, no 128-lane XLU row-sum).
    ov = jnp.einsum("gmn,gnd->gmd", p, v.astype(softmax_dtype),
                    preferred_element_type=jnp.float32)  # (G', GL, KEY_DIM+1)
    oh = ov[..., :KEY_DIM] * pl.reciprocal(ov[..., KEY_DIM:], approx=True)

    # ---- fused output projection: one (rows, 16) @ (16, 32) matmul ----
    oh = oh.reshape(N_HEAD, rows, KEY_DIM)
    slab = jnp.concatenate([oh[h] for h in range(N_HEAD)], axis=-1)  # (rows, HK)
    out = jnp.dot(slab, wf_ref[...], preferred_element_type=jnp.float32)
    out = out + bf_ref[...] + residual
    o_ref[...] = out.reshape(TB, L, D).astype(o_ref.dtype)


def attention_block(x, fused, *, tb=512, softmax_dtype=None,
                    vmem_limit_bytes=32 * 1024 * 1024):
    """x: (B, L, D_MODEL) float32.  fused: dict from fuse_params()."""
    B, L, D = x.shape
    assert D == D_MODEL
    if softmax_dtype is None:
        softmax_dtype = jnp.bfloat16 if _bf16_softmax_default() else jnp.float32

    r = _seqs_per_group(L)
    gl = r * L

    # --- batch tiling: minimise padding, keep >= 2 grid steps when possible ---
    groups_total = _cdiv(B, r)
    n_steps = _cdiv(groups_total, max(1, tb // r))
    if n_steps == 1 and groups_total >= 2:
        n_steps = 2                     # feed both TensorCores (megacore / v7x)
    groups_per_step = _cdiv(groups_total, n_steps)
    tb_eff = groups_per_step * r        # sequences per grid step (multiple of r)
    b_pad = tb_eff * n_steps            # padding <= n_steps*r - 1 sequences
    if b_pad != B:
        # zero-padded sequences only attend to themselves (block-diag mask)
        x = jnp.concatenate([x, jnp.zeros((b_pad - B, L, D), x.dtype)], axis=0)

    # block-diagonal additive mask, built once on the host (off the hot path)
    seq_id = jnp.arange(gl, dtype=jnp.int32) // L
    mask = jnp.where(seq_id[:, None] == seq_id[None, :], 0.0,
                     MASK_NEG).astype(jnp.float32)

    def const_spec(shape):
        zeros = (0,) * len(shape)
        return pl.BlockSpec(shape, lambda b: zeros)

    kernel = functools.partial(_attention_kernel, softmax_dtype=softmax_dtype)

    out = pl.pallas_call(
        kernel,
        out_shape=jax.ShapeDtypeStruct((b_pad, L, D), x.dtype),
        grid=(n_steps,),
        in_specs=[
            pl.BlockSpec((tb_eff, L, D), lambda b: (b, 0, 0)),    # x
            const_spec((1, D)),                                    # ln weight
            const_spec((1, D)),                                    # ln bias
            const_spec((D, QKV_W)),                                # fused W_qkv
            const_spec((1, QKV_W)),                                # fused b_qkv
            const_spec((HK, D)),                                   # fc weight
            const_spec((1, D)),                                    # fc bias
            const_spec((gl, gl)),                                  # block-diag mask
        ],
        out_specs=pl.BlockSpec((tb_eff, L, D), lambda b: (b, 0, 0)),
        compiler_params=pltpu.CompilerParams(
            dimension_semantics=("parallel",),
            vmem_limit_bytes=vmem_limit_bytes),
    )(x,
      fused["ln_w"], fused["ln_b"],
      fused["w_qkv"], fused["b_qkv"],
      fused["wf"], fused["bf"],
      mask)

    return out[:B] if b_pad != B else out


def _xavier_uniform(key, fan_in, fan_out):
    # Glorot/Xavier uniform for Linear(fan_in -> fan_out); stored as (in, out).
    limit = math.sqrt(6.0 / (fan_in + fan_out))
    return jax.random.uniform(key, (fan_in, fan_out), jnp.float32, -limit, limit)


def init_params(key):
    kq, kk, kv, kf = jax.random.split(key, 4)
    return {
        # glorot_weight_zero_bias: xavier weights, zero biases, LayerNorm w=1 b=0
        "ln_w": jnp.ones((1, D_MODEL), jnp.float32),
        "ln_b": jnp.zeros((1, D_MODEL), jnp.float32),
        "wq": _xavier_uniform(kq, D_MODEL, HK), "bq": jnp.zeros((1, HK), jnp.float32),
        "wk": _xavier_uniform(kk, D_MODEL, HK), "bk": jnp.zeros((1, HK), jnp.float32),
        "wv": _xavier_uniform(kv, D_MODEL, HK), "bv": jnp.zeros((1, HK), jnp.float32),
        "wf": _xavier_uniform(kf, HK, D_MODEL), "bf": jnp.zeros((1, D_MODEL), jnp.float32),
    }


def fuse_params(p):
    """One-time constant transform of the module parameters:
       * concat Q|K|V weights, fold the 1/sqrt(key_dim) scale into the Q columns,
       * append a constant-1 output lane per head to the V block (zero weight
         column + bias 1) so the PV matmul emits the softmax row-sums for free."""
    scale = 1.0 / math.sqrt(KEY_DIM)
    w_parts = [p["wq"] * scale, p["wk"]]
    b_parts = [p["bq"] * scale, p["bk"]]
    for h in range(N_HEAD):
        w_parts += [p["wv"][:, h * KEY_DIM:(h + 1) * KEY_DIM],
                    jnp.zeros((D_MODEL, 1), jnp.float32)]
        b_parts += [p["bv"][:, h * KEY_DIM:(h + 1) * KEY_DIM],
                    jnp.ones((1, 1), jnp.float32)]
    return {
        "ln_w": p["ln_w"], "ln_b": p["ln_b"],
        "w_qkv": jnp.concatenate(w_parts, axis=1),
        "b_qkv": jnp.concatenate(b_parts, axis=1),
        "wf": p["wf"], "bf": p["bf"],
    }


def _reference(x, p):
    """Pure-JAX reference mirroring the PyTorch forward (eval mode)."""
    mean = jnp.mean(x, axis=-1, keepdims=True)
    var = jnp.mean((x - mean) ** 2, axis=-1, keepdims=True)
    xn = (x - mean) / jnp.sqrt(var + LN_EPS) * p["ln_w"][0] + p["ln_b"][0]
    q = xn @ p["wq"] + p["bq"][0]
    k = xn @ p["wk"] + p["bk"][0]
    v = xn @ p["wv"] + p["bv"][0]
    B, L, _ = x.shape
    rs = lambda t: t.reshape(B, L, N_HEAD, KEY_DIM).transpose(2, 0, 1, 3)
    qh, kh, vh = rs(q), rs(k), rs(v)
    attn = jnp.einsum("hblk,hbtk->hblt", qh, kh) / math.sqrt(KEY_DIM)
    attn = jax.nn.softmax(attn, axis=3)
    out = jnp.einsum("hblt,hbtv->hblv", attn, vh)
    out = out.transpose(1, 2, 0, 3).reshape(B, L, HK)
    out = out @ p["wf"] + p["bf"][0]
    return out + x


if __name__ == "__main__":
    key = jax.random.PRNGKey(0)
    kx, kp, kx2 = jax.random.split(key, 3)

    params = init_params(kp)
    fused = fuse_params(params)

    # Tolerance depends on whether the bf16 softmax path is active (v6e/v7x).
    bf16_active = _bf16_softmax_default()
    tol = 3e-2 if bf16_active else 5e-3

    # Small demo shape (pads up to one group of 16 sequences, grid = 1).
    B, L = 2, 8
    x = jax.random.normal(kx, (B, L, D_MODEL), jnp.float32)
    out = jax.block_until_ready(attention_block(x, fused))
    ref = _reference(x, params)
    assert out.shape == (B, L, D_MODEL)
    assert jnp.allclose(out, ref, atol=tol, rtol=tol), (
        f"max err {jnp.max(jnp.abs(out - ref))}")

    # Larger batch: multi-step grid (2 steps x 144 sequences) and padding path.
    B2 = 260
    x2 = jax.random.normal(kx2, (B2, L, D_MODEL), jnp.float32)
    out2 = jax.block_until_ready(attention_block(x2, fused))
    ref2 = _reference(x2, params)
    assert out2.shape == (B2, L, D_MODEL)
    assert jnp.allclose(out2, ref2, atol=tol, rtol=tol), (
        f"max err {jnp.max(jnp.abs(out2 - ref2))}")

    # Explicit f32 path (exercised regardless of which chip auto-detect picked).
    out3 = jax.block_until_ready(
        attention_block(x2, fused, softmax_dtype=jnp.float32))
    assert jnp.allclose(out3, ref2, atol=5e-3, rtol=5e-3), (
        f"max err {jnp.max(jnp.abs(out3 - ref2))}")

    print("KERNEL_OK")
</pallas_src>

<mosaic_0001>
module attributes {stable_mosaic.version = 11 : i64} {
  func.func @_attention_kernel(%arg0: i32, %arg1: memref<16x8x32xf32, #tpu.memory_space<vmem>>, %arg2: memref<1x32xf32, #tpu.memory_space<vmem>>, %arg3: memref<1x32xf32, #tpu.memory_space<vmem>>, %arg4: memref<32x50xf32, #tpu.memory_space<vmem>>, %arg5: memref<1x50xf32, #tpu.memory_space<vmem>>, %arg6: memref<16x32xf32, #tpu.memory_space<vmem>>, %arg7: memref<1x32xf32, #tpu.memory_space<vmem>>, %arg8: memref<128x128xf32, #tpu.memory_space<vmem>>, %arg9: memref<16x8x32xf32, #tpu.memory_space<vmem>>) attributes {dimension_semantics = [#tpu.dimension_semantics<parallel>], iteration_bounds = array<i64: 1>, scalar_prefetch = 0 : i64, scratch_operands = 0 : i64, tpu.core_type = #tpu.core_type<tc>, window_params = [{transform_indices = @transform_0, window_bounds = array<i64: 16, 8, 32>}, {pipeline_mode = #tpu.pipeline_mode<synchronous>, transform_indices = @transform_1, window_bounds = array<i64: 1, 32>}, {pipeline_mode = #tpu.pipeline_mode<synchronous>, transform_indices = @transform_2, window_bounds = array<i64: 1, 32>}, {pipeline_mode = #tpu.pipeline_mode<synchronous>, transform_indices = @transform_3, window_bounds = array<i64: 32, 50>}, {pipeline_mode = #tpu.pipeline_mode<synchronous>, transform_indices = @transform_4, window_bounds = array<i64: 1, 50>}, {pipeline_mode = #tpu.pipeline_mode<synchronous>, transform_indices = @transform_5, window_bounds = array<i64: 16, 32>}, {pipeline_mode = #tpu.pipeline_mode<synchronous>, transform_indices = @transform_6, window_bounds = array<i64: 1, 32>}, {pipeline_mode = #tpu.pipeline_mode<synchronous>, transform_indices = @transform_7, window_bounds = array<i64: 128, 128>}, {transform_indices = @transform_8, window_bounds = array<i64: 16, 8, 32>}]} {
    %c0 = arith.constant 0 : index
    %c0_0 = arith.constant 0 : index
    %c0_1 = arith.constant 0 : index
    %0 = vector.load %arg1[%c0, %c0_0, %c0_1] : memref<16x8x32xf32, #tpu.memory_space<vmem>>, vector<16x8x32xf32>
    %1 = vector.shape_cast %0 : vector<16x8x32xf32> to vector<128x32xf32>
    %cst = arith.constant dense<0.000000e+00> : vector<128xf32>
    %2 = vector.multi_reduction <add>, %1, %cst [1] : vector<128x32xf32> to vector<128xf32>
    %3 = vector.shape_cast %2 : vector<128xf32> to vector<128x1xf32>
    %cst_2 = arith.constant 3.200000e+01 : f32
    %4 = vector.broadcast %cst_2 : f32 to vector<128x1xf32>
    %5 = arith.divf %3, %4 : vector<128x1xf32>
    %6 = vector.broadcast %5 : vector<128x1xf32> to vector<128x32xf32>
    %7 = arith.subf %1, %6 : vector<128x32xf32>
    %8 = arith.mulf %7, %7 : vector<128x32xf32>
    %cst_3 = arith.constant dense<0.000000e+00> : vector<128xf32>
    %9 = vector.multi_reduction <add>, %8, %cst_3 [1] : vector<128x32xf32> to vector<128xf32>
    %10 = vector.shape_cast %9 : vector<128xf32> to vector<128x1xf32>
    %cst_4 = arith.constant 3.200000e+01 : f32
    %11 = vector.broadcast %cst_4 : f32 to vector<128x1xf32>
    %12 = arith.divf %10, %11 : vector<128x1xf32>
    %cst_5 = arith.constant 9.99999974E-6 : f32
    %13 = vector.broadcast %cst_5 : f32 to vector<128x1xf32>
    %14 = arith.addf %12, %13 : vector<128x1xf32>
    %15 = math.rsqrt %14 : vector<128x1xf32>
    %16 = vector.broadcast %15 : vector<128x1xf32> to vector<128x32xf32>
    %17 = arith.mulf %7, %16 : vector<128x32xf32>
    %c0_6 = arith.constant 0 : index
    %c0_7 = arith.constant 0 : index
    %18 = vector.load %arg2[%c0_6, %c0_7] : memref<1x32xf32, #tpu.memory_space<vmem>>, vector<1x32xf32>
    %19 = vector.broadcast %18 : vector<1x32xf32> to vector<128x32xf32>
    %20 = arith.mulf %17, %19 : vector<128x32xf32>
    %c0_8 = arith.constant 0 : index
    %c0_9 = arith.constant 0 : index
    %21 = vector.load %arg3[%c0_8, %c0_9] : memref<1x32xf32, #tpu.memory_space<vmem>>, vector<1x32xf32>
    %22 = vector.broadcast %21 : vector<1x32xf32> to vector<128x32xf32>
    %23 = arith.addf %20, %22 : vector<128x32xf32>
    %c0_10 = arith.constant 0 : index
    %c0_11 = arith.constant 0 : index
    %24 = vector.load %arg4[%c0_10, %c0_11] : memref<32x50xf32, #tpu.memory_space<vmem>>, vector<32x50xf32>
    %cst_12 = arith.constant dense<0.000000e+00> : vector<128x50xf32>
    %25 = tpu.matmul %23, %24, %cst_12 {dimension_numbers = #tpu.dot_dimension_numbers<[1], [0], [0], [1], [0, 0, 1, 1], [], []>} : vector<128x32xf32>, vector<32x50xf32>, vector<128x50xf32> -> vector<128x50xf32>
    %c0_13 = arith.constant 0 : index
    %c0_14 = arith.constant 0 : index
    %26 = vector.load %arg5[%c0_13, %c0_14] : memref<1x50xf32, #tpu.memory_space<vmem>>, vector<1x50xf32>
    %27 = vector.broadcast %26 : vector<1x50xf32> to vector<128x50xf32>
    %28 = arith.addf %25, %27 : vector<128x50xf32>
    %29 = vector.extract_strided_slice %28 {offsets = [0, 0], sizes = [128, 8], strides = [1, 1]} : vector<128x50xf32> to vector<128x8xf32>
    %30 = vector.shape_cast %29 : vector<128x8xf32> to vector<1x128x8xf32>
    %31 = vector.extract_strided_slice %28 {offsets = [0, 8], sizes = [128, 8], strides = [1, 1]} : vector<128x50xf32> to vector<128x8xf32>
    %32 = vector.shape_cast %31 : vector<128x8xf32> to vector<1x128x8xf32>
    %33 = tpu.concatenate %30, %32 in 0 : vector<1x128x8xf32>, vector<1x128x8xf32> -> vector<2x128x8xf32>
    %34 = vector.extract_strided_slice %28 {offsets = [0, 16], sizes = [128, 8], strides = [1, 1]} : vector<128x50xf32> to vector<128x8xf32>
    %35 = vector.shape_cast %34 : vector<128x8xf32> to vector<1x128x8xf32>
    %36 = vector.extract_strided_slice %28 {offsets = [0, 24], sizes = [128, 8], strides = [1, 1]} : vector<128x50xf32> to vector<128x8xf32>
    %37 = vector.shape_cast %36 : vector<128x8xf32> to vector<1x128x8xf32>
    %38 = tpu.concatenate %35, %37 in 0 : vector<1x128x8xf32>, vector<1x128x8xf32> -> vector<2x128x8xf32>
    %39 = vector.extract_strided_slice %28 {offsets = [0, 32], sizes = [128, 9], strides = [1, 1]} : vector<128x50xf32> to vector<128x9xf32>
    %40 = vector.shape_cast %39 : vector<128x9xf32> to vector<1x128x9xf32>
    %41 = vector.extract_strided_slice %28 {offsets = [0, 41], sizes = [128, 9], strides = [1, 1]} : vector<128x50xf32> to vector<128x9xf32>
    %42 = vector.shape_cast %41 : vector<128x9xf32> to vector<1x128x9xf32>
    %43 = tpu.concatenate %40, %42 in 0 : vector<1x128x9xf32>, vector<1x128x9xf32> -> vector<2x128x9xf32>
    "tpu.trace_start"() <{level = 10 : i32, message = "gmd,gnd->gmn"}> : () -> ()
    %cst_15 = arith.constant dense<0.000000e+00> : vector<2x128x128xf32>
    %44 = tpu.matmul %33, %38, %cst_15 {dimension_numbers = #tpu.dot_dimension_numbers<[2], [2], [1], [1], [0, 0, 0, 1, 1, 1], [0], [0]>} : vector<2x128x8xf32>, vector<2x128x8xf32>, vector<2x128x128xf32> -> vector<2x128x128xf32>
    "tpu.trace_stop"() : () -> ()
    %c0_16 = arith.constant 0 : index
    %c0_17 = arith.constant 0 : index
    %45 = vector.load %arg8[%c0_16, %c0_17] : memref<128x128xf32, #tpu.memory_space<vmem>>, vector<128x128xf32>
    %46 = vector.shape_cast %45 : vector<128x128xf32> to vector<1x128x128xf32>
    %47 = vector.broadcast %46 : vector<1x128x128xf32> to vector<2x128x128xf32>
    %48 = arith.addf %44, %47 : vector<2x128x128xf32>
    %cst_18 = arith.constant dense<0xFF800000> : vector<2x128xf32>
    %49 = vector.multi_reduction <maximumf>, %48, %cst_18 [2] : vector<2x128x128xf32> to vector<2x128xf32>
    %50 = vector.shape_cast %49 : vector<2x128xf32> to vector<2x128x1xf32>
    %51 = vector.broadcast %50 : vector<2x128x1xf32> to vector<2x128x128xf32>
    %52 = arith.subf %48, %51 : vector<2x128x128xf32>
    %53 = math.exp %52 : vector<2x128x128xf32>
    "tpu.trace_start"() <{level = 10 : i32, message = "gmn,gnd->gmd"}> : () -> ()
    %cst_19 = arith.constant dense<0.000000e+00> : vector<2x128x9xf32>
    %54 = tpu.matmul %53, %43, %cst_19 {dimension_numbers = #tpu.dot_dimension_numbers<[2], [1], [1], [2], [0, 0, 0, 1, 1, 2], [0], [0]>} : vector<2x128x128xf32>, vector<2x128x9xf32>, vector<2x128x9xf32> -> vector<2x128x9xf32>
    "tpu.trace_stop"() : () -> ()
    %55 = vector.extract_strided_slice %54 {offsets = [0, 0, 0], sizes = [2, 128, 8], strides = [1, 1, 1]} : vector<2x128x9xf32> to vector<2x128x8xf32>
    %56 = vector.extract_strided_slice %54 {offsets = [0, 0, 8], sizes = [2, 128, 1], strides = [1, 1, 1]} : vector<2x128x9xf32> to vector<2x128x1xf32>
    %57 = tpu.reciprocal %56 {approx = true} : vector<2x128x1xf32> -> vector<2x128x1xf32>
    %58 = vector.broadcast %57 : vector<2x128x1xf32> to vector<2x128x8xf32>
    %59 = arith.mulf %55, %58 : vector<2x128x8xf32>
    %60 = vector.extract_strided_slice %59 {offsets = [0, 0, 0], sizes = [1, 128, 8], strides = [1, 1, 1]} : vector<2x128x8xf32> to vector<1x128x8xf32>
    %61 = vector.shape_cast %60 : vector<1x128x8xf32> to vector<128x8xf32>
    %62 = vector.extract_strided_slice %59 {offsets = [1, 0, 0], sizes = [1, 128, 8], strides = [1, 1, 1]} : vector<2x128x8xf32> to vector<1x128x8xf32>
    %63 = vector.shape_cast %62 : vector<1x128x8xf32> to vector<128x8xf32>
    %64 = tpu.concatenate %61, %63 in 1 : vector<128x8xf32>, vector<128x8xf32> -> vector<128x16xf32>
    %c0_20 = arith.constant 0 : index
    %c0_21 = arith.constant 0 : index
    %65 = vector.load %arg6[%c0_20, %c0_21] : memref<16x32xf32, #tpu.memory_space<vmem>>, vector<16x32xf32>
    %cst_22 = arith.constant dense<0.000000e+00> : vector<128x32xf32>
    %66 = tpu.matmul %64, %65, %cst_22 {dimension_numbers = #tpu.dot_dimension_numbers<[1], [0], [0], [1], [0, 0, 1, 1], [], []>} : vector<128x16xf32>, vector<16x32xf32>, vector<128x32xf32> -> vector<128x32xf32>
    %c0_23 = arith.constant 0 : index
    %c0_24 = arith.constant 0 : index
    %67 = vector.load %arg7[%c0_23, %c0_24] : memref<1x32xf32, #tpu.memory_space<vmem>>, vector<1x32xf32>
    %68 = vector.broadcast %67 : vector<1x32xf32> to vector<128x32xf32>
    %69 = arith.addf %66, %68 : vector<128x32xf32>
    %70 = arith.addf %69, %1 : vector<128x32xf32>
    %71 = vector.shape_cast %70 : vector<128x32xf32> to vector<16x8x32xf32>
    %c0_25 = arith.constant 0 : index
    %c0_26 = arith.constant 0 : index
    %c0_27 = arith.constant 0 : index
    %72 = vector.load %arg9[%c0_25, %c0_26, %c0_27] : memref<16x8x32xf32, #tpu.memory_space<vmem>>, vector<16x8x32xf32>
    tpu.vector_store %arg9[%c0_25, %c0_26, %c0_27], %71 {strides = array<i32>} : memref<16x8x32xf32, #tpu.memory_space<vmem>>, vector<16x8x32xf32>,
    return
  }
  func.func @transform_0(%arg0: i32) -> (i32, i32, i32) {
    %c0_i32 = arith.constant 0 : i32
    %c0_i32_0 = arith.constant 0 : i32
    %c0_i32_1 = arith.constant 0 : i32
    return %arg0, %c0_i32, %c0_i32_0 : i32, i32, i32
  }
  func.func @transform_1(%arg0: i32) -> (i32, i32) {
    %c0_i32 = arith.constant 0 : i32
    %c0_i32_0 = arith.constant 0 : i32
    %c0_i32_1 = arith.constant 0 : i32
    return %c0_i32, %c0_i32_0 : i32, i32
  }
  func.func @transform_2(%arg0: i32) -> (i32, i32) {
    %c0_i32 = arith.constant 0 : i32
    %c0_i32_0 = arith.constant 0 : i32
    %c0_i32_1 = arith.constant 0 : i32
    return %c0_i32, %c0_i32_0 : i32, i32
  }
  func.func @transform_3(%arg0: i32) -> (i32, i32) {
    %c0_i32 = arith.constant 0 : i32
    %c0_i32_0 = arith.constant 0 : i32
    %c0_i32_1 = arith.constant 0 : i32
    return %c0_i32, %c0_i32_0 : i32, i32
  }
  func.func @transform_4(%arg0: i32) -> (i32, i32) {
    %c0_i32 = arith.constant 0 : i32
    %c0_i32_0 = arith.constant 0 : i32
    %c0_i32_1 = arith.constant 0 : i32
    return %c0_i32, %c0_i32_0 : i32, i32
  }
  func.func @transform_5(%arg0: i32) -> (i32, i32) {
    %c0_i32 = arith.constant 0 : i32
    %c0_i32_0 = arith.constant 0 : i32
    %c0_i32_1 = arith.constant 0 : i32
    return %c0_i32, %c0_i32_0 : i32, i32
  }
  func.func @transform_6(%arg0: i32) -> (i32, i32) {
    %c0_i32 = arith.constant 0 : i32
    %c0_i32_0 = arith.constant 0 : i32
    %c0_i32_1 = arith.constant 0 : i32
    return %c0_i32, %c0_i32_0 : i32, i32
  }
  func.func @transform_7(%arg0: i32) -> (i32, i32) {
    %c0_i32 = arith.constant 0 : i32
    %c0_i32_0 = arith.constant 0 : i32
    %c0_i32_1 = arith.constant 0 : i32
    return %c0_i32, %c0_i32_0 : i32, i32
  }
  func.func @transform_8(%arg0: i32) -> (i32, i32, i32) {
    %c0_i32 = arith.constant 0 : i32
    %c0_i32_0 = arith.constant 0 : i32
    %c0_i32_1 = arith.constant 0 : i32
    return %arg0, %c0_i32, %c0_i32_0 : i32, i32, i32
  }
}

</mosaic_0001>

<bundles_post_ra>
// kernel: tpu_custom_call.1
= control target key start
LH: loop header
LB: loop body
LE: loop exit
PB: predicated region body
PF: predicated region fallthrough
CT: control target
= control target key end

     0   :  { %13 = vsyncpa [#allocation3], 0  ;;  %s3616_s0 = inlined_call_operand.hbm [shape: f32[16,8,32], index: 0, kind: input, shape index: {}]   ;;  %s3617_s1 = inlined_call_operand.hbm [shape: f32[1,32], index: 1, kind: input, shape index: {}]   ;;  %s3618_s2 = inlined_call_operand.vmem [shape: f32[1,32], index: 2, kind: input, shape index: {}]   ;;  %s3619_s3 = inlined_call_operand.hbm [shape: f32[32,50], index: 3, kind: input, shape index: {}]   ;;  %s3620_s4 = inlined_call_operand.vmem [shape: f32[1,50], index: 4, kind: input, shape index: {}]   ;;  %s3621_s5 = inlined_call_operand.hbm [shape: f32[16,32], index: 5, kind: input, shape index: {}]   ;;  %s3622_s6 = inlined_call_operand.vmem [shape: f32[1,32], index: 6, kind: input, shape index: {}]   ;;  %s3623_s7 = inlined_call_operand.hbm [shape: f32[128,128], index: 7, kind: input, shape index: {}]   ;;  %s3624_s8 = inlined_call_operand.hbm [shape: f32[16,8,32], index: 8, kind: output, shape index: {}]  }
   0x1   :  { %14 = vsyncpa [#allocation6], 0 }
   0x2   :  { %15 = vsyncpa [#allocation9], 0  ;;  %s35_s29 = sshll.u32 %s3617_s1, 4  ;;  %s36_s29 = int_to_ptr.hbm [resolvable:$true] %s35_s29 }
   0x3   :  { %16 = vsyncpa [#allocation4], 0  ;;  %s2528_s30 = smov [#allocation5]   ;;  %s62_s12 = sshll.u32 %s3621_s5, 4  ;;  %s63_s12 = int_to_ptr.hbm [resolvable:$true] %s62_s12 }
   0x4   :  { %s37_s9 = sshll.u32 %s2528_s30, 4  ;;  %s2529_s13 = smov [#allocation8]   ;;  %s38_s9 = int_to_ptr.vmem [resolvable:$true] %s37_s9 }
   0x5   :  { %40 = dma.hbm_to_vmem [thread:$0]  %s36_s29, 16, %s38_s9, [#allocation6]  }
   0x6   :  { %s64_s14 = sshll.u32 %s2529_s13, 4  ;;  %s21_s17 = sshll.u32 %s3616_s0, 4  ;;  %s65_s14 = int_to_ptr.vmem [resolvable:$true] %s64_s14  ;;  %s22_s17 = int_to_ptr.hbm [resolvable:$true] %s21_s17 }
   0x7   :  { %s2530_s1 = smov 128   ;;  %s2531_s18 = smov 8  }
   0x8   :  { %70 = dma.hbm_to_vmem [thread:$0]  %s63_s12, 256, %s65_s14, [#allocation9], %s2530_s1, %s2530_s1, %s2531_s18  }
   0x9   :  { %s47_s21 = sshll.u32 %s3619_s3, 4  ;;  %s2532_s5 = smov [#allocation2]   ;;  %s48_s21 = int_to_ptr.hbm [resolvable:$true] %s47_s21 }
   0xa   :  { %s23_s22 = sshll.u32 %s2532_s5, 4  ;;  %s2533_s0 = smov [#allocation7]   ;;  %s24_s22 = int_to_ptr.vmem [resolvable:$true] %s23_s22 }
   0xb   :  { %29 = dma.hbm_to_vmem [thread:$0]  %s22_s17, 2048, %s24_s22, [#allocation3], %s2530_s1, %s2530_s1, %s2531_s18  }
   0xc   :  { %s49_s23 = sshll.u32 %s2533_s0, 4  ;;  %s77_s26 = sshll.u32 %s3623_s7, 4  ;;  %s50_s23 = int_to_ptr.vmem [resolvable:$true] %s49_s23  ;;  %s78_s26 = int_to_ptr.hbm [resolvable:$true] %s77_s26 }
   0xd   :  { %55 = dma.hbm_to_vmem [thread:$0]  %s48_s21, 512, %s50_s23, [#allocation6], %s2530_s1, %s2530_s1, %s2531_s18  }
   0xe   :  { %s2534_s3 = smov [#allocation10]  }
   0xf   :  { %s79_s27 = sshll.u32 %s2534_s3, 4  ;;  %s80_s27 = int_to_ptr.vmem [resolvable:$true] %s79_s27 }
  0x10   :  { %85 = dma.hbm_to_vmem [thread:$0]  %s78_s26, 2048, %s80_s27, [#allocation9], %s2530_s1, %s2530_s1, %s2531_s18  }
  0x11   :  { %2520 = dma.done.wait [#allocation3], 2048  }
  0x12   :  { %2521 = vsyncadd [#allocation3], 4294965248 }
  0x13   :  { %2522 = dma.done.wait [#allocation6], 528  }
  0x14   :  { %2523 = vsyncadd [#allocation6], 4294966768 }
  0x15   :  { %2524 = dma.done.wait [#allocation9], 2304  }
  0x16   :  { %2525 = vsyncadd [#allocation9], 4294964992  ;;  %vm122_vm0 = vcmask 261120   ;;  %v112_v0 = vld [vmem:[#allocation2 + $0x30] sm:$0xff]  ;;  %v110_v1 = vld [vmem:[#allocation2 + $0x20] sm:$0xff]  ;;  %v2535_v14 = vmov 32.0  }
  0x17   :  { %v2614_v2 = vld [vmem:[#allocation2 + $0x40] sm:$0xff]  ;;  %v141_v3 = vsel %vm122_vm0, %v112_v0, 0.0  ;;  %v135_v4 = vsel %vm122_vm0, %v110_v1, 0.0  ;;  %v111_v6 = vld [vmem:[#allocation2 + $0x28] sm:$0xff]  ;;  %v113_v7 = vld [vmem:[#allocation2 + $0x38] sm:$0xff]  ;;  %2198 = vrcp.f32 %v2535_v14  ;;  %s2536_s30 = smov 120  }
  0x18   :  { %v147_v5 = vsel %vm122_vm0, %v2614_v2, 0.0  ;;  %142 = vadd.xlane.f32.xlu1 %v141_v3  ;;  %136 = vadd.xlane.f32.xlu0 %v135_v4  ;;  %v115_v8 = vld [vmem:[#allocation2 + $0x48] sm:$0xff]  ;;  %v138_v9 = vsel %vm122_vm0, %v111_v6, 0.0  ;;  %v144_v10 = vsel %vm122_vm0, %v113_v7, 0.0  ;;  %v116_v12 = vld [vmem:[#allocation2 + $0x50] sm:$0xff]  ;;  %v2643_v39 = vld [vmem:[#allocation2 + $0x58] sm:$0xff] }
  0x19   :  { %148 = vadd.xlane.f32.xlu2 %v147_v5  ;;  %v150_v11 = vsel %vm122_vm0, %v115_v8, 0.0  ;;  %v153_v13 = vsel %vm122_vm0, %v116_v12, 0.0  ;;  %v2639_v36 = vld [vmem:[#allocation2 + $0x68] sm:$0xff]  ;;  %v156_v44 = vsel %vm122_vm0, %v2643_v39, 0.0  ;;  %v2663_v50 = vld [vmem:[#allocation2 + $0x60] sm:$0xff]  ;;  %v2673_v57 = vld [vmem:[#allocation2 + $0x70] sm:$0xff] }
  0x1a   :  { %v162_v41 = vsel %vm122_vm0, %v2639_v36, 0.0  ;;  %v159_v54 = vsel %vm122_vm0, %v2663_v50, 0.0  ;;  %v165_v60 = vsel %vm122_vm0, %v2673_v57, 0.0  ;;  %v2684_v63 = vld [vmem:[#allocation2 + $0x78] sm:$0xff]  ;;  %s2538_s9 = smov 96   ;;  %s2539_s10 = smov 119  }
  0x1b   :  { %v525_v4 = vld [vmem:[#allocation7 + $0x18] sm:$0xff]  ;;  %v524_v5 = vld [vmem:[#allocation7 + $0x10] sm:$0xff]  ;;  %s1910_s16 = sshll.u32 %s3624_s8, 4  ;;  %s1911_s16 = int_to_ptr.hbm [resolvable:$true] %s1910_s16 }
  0x1c   :  { %2021 = vmatpush.msra.mxu2 %v525_v4  ;;  %590 = vmatpush.msra.mxu0 %v525_v4 }
  0x1d   :  { %v2199_v15 = vpop.eup %2198 }
  0x1e   :  { %v172_v16 = vmul.f32 32.0, %v2199_v15  ;;  %vm176_vm1 = vweird.f32 %v2199_v15  ;;  %2022 = vmatpush.msra.mxu2 %v524_v5  ;;  %591 = vmatpush.msra.mxu0 %v524_v5 }
  0x20   :  { %139 = vadd.xlane.f32.xlu0 %v138_v9  ;;  %145 = vadd.xlane.f32.xlu1 %v144_v10  ;;  %v173_v17 = vsub.f32 1.0, %v172_v16 }
  0x21   :  { %151 = vadd.xlane.f32.xlu2 %v150_v11 }
  0x22   :  { %v174_v18 = vmul.f32 %v2199_v15, %v173_v17 }
  0x24   :  { %v175_v19 = vadd.f32 %v2199_v15, %v174_v18 }
  0x26   :  { %v2624_v20 = vsel %vm176_vm1, %v2199_v15, %v175_v19 }
  0x28   :  { %154 = vadd.xlane.f32.xlu1 %v153_v13 }
  0x8b   :  { %v143_v21 = vpop.xlane.xlu1 %142  ;;  %v137_v22 = vpop.xlane.xlu0 %136 }
  0x8c   :  { %v184_v23 = vmul.f32 %v2624_v20, %v143_v21  ;;  %v182_v24 = vmul.f32 %v2624_v20, %v137_v22  ;;  %v149_v25 = vpop.xlane.xlu2 %148 }
  0x8d   :  { %v186_v49 = vmul.f32 %v2624_v20, %v149_v25 }
  0x8e   :  { %v2628_v26 = vsub.f32 %v112_v0, %v184_v23  ;;  %v2630_v27 = vsub.f32 %v110_v1, %v182_v24  ;;  %v168_v1 = vsel %vm122_vm0, %v2684_v63, 0.0 }
  0x8f   :  { %v2668_v53 = vsub.f32 %v2614_v2, %v186_v49  ;;  %v2689_v2 = vld [vmem:[#allocation2] sm:$0xff] }
  0x90   :  { %v216_v28 = vmul.f32 %v2628_v26, %v2628_v26  ;;  %v214_v29 = vmul.f32 %v2630_v27, %v2630_v27  ;;  %v123_v3 = vsel %vm122_vm0, %v2689_v2, 0.0 }
  0x91   :  { %v218_v58 = vmul.f32 %v2668_v53, %v2668_v53 }
  0x92   :  { %v244_v30 = vsel %vm122_vm0, %v216_v28, 0.0  ;;  %v238_v31 = vsel %vm122_vm0, %v214_v29, 0.0 }
  0x93   :  { %245 = vadd.xlane.f32.xlu1 %v244_v30  ;;  %239 = vadd.xlane.f32.xlu0 %v238_v31  ;;  %v140_v32 = vpop.xlane.xlu0 %139  ;;  %v146_v33 = vpop.xlane.xlu1 %145  ;;  %v250_v61 = vsel %vm122_vm0, %v218_v58, 0.0 }
  0x94   :  { %v183_v34 = vmul.f32 %v2624_v20, %v140_v32  ;;  %v152_v35 = vpop.xlane.xlu2 %151  ;;  %v185_v37 = vmul.f32 %v2624_v20, %v146_v33 }
  0x95   :  { %v187_v38 = vmul.f32 %v2624_v20, %v152_v35 }
  0x96   :  { %v2645_v40 = vsub.f32 %v111_v6, %v183_v34  ;;  %v2651_v43 = vsub.f32 %v113_v7, %v185_v37  ;;  %v523_v6 = vld [vmem:[#allocation7 + $0x8] sm:$0xff]  ;;  %v522_v7 = vld [vmem:[#allocation7] sm:$0xff] }
  0x97   :  { %v2649_v42 = vsub.f32 %v115_v8, %v187_v38  ;;  %2023 = vmatpush.msra.mxu2 %v523_v6  ;;  %592 = vmatpush.msra.mxu0 %v523_v6 }
  0x98   :  { %v215_v45 = vmul.f32 %v2645_v40, %v2645_v40  ;;  %v217_v48 = vmul.f32 %v2651_v43, %v2651_v43 }
  0x99   :  { %v219_v47 = vmul.f32 %v2649_v42, %v2649_v42  ;;  %2024 = vmatpush.msra.mxu2 %v522_v7  ;;  %593 = vmatpush.msra.mxu0 %v522_v7  ;;  %v2745_v7 = vld [vmem:[#allocation2 + $0x10] sm:$0xff] }
  0x9a   :  { %v241_v46 = vsel %vm122_vm0, %v215_v45, 0.0  ;;  %v247_v52 = vsel %vm122_vm0, %v217_v48, 0.0 }
  0x9b   :  { %163 = vadd.xlane.f32.xlu1 %v162_v41  ;;  %157 = vadd.xlane.f32.xlu0 %v156_v44  ;;  %v253_v51 = vsel %vm122_vm0, %v219_v47, 0.0  ;;  %v155_v55 = vpop.xlane.xlu1 %154 }
  0x9c   :  { %242 = vadd.xlane.f32.xlu2 %v241_v46  ;;  %v188_v56 = vmul.f32 %v2624_v20, %v155_v55 }
  0x9e   :  { %v2677_v59 = vsub.f32 %v116_v12, %v188_v56  ;;  %v2733_v56 = vld [vmem:[#allocation5] ss:$0 sm:$0xff] }
  0xa0   :  { %v220_v62 = vmul.f32 %v2677_v59, %v2677_v59 }
  0xa2   :  { %v256_v0 = vsel %vm122_vm0, %v220_v62, 0.0 }
  0xa3   :  { %254 = vadd.xlane.f32.xlu1 %v253_v51  ;;  %248 = vadd.xlane.f32.xlu0 %v247_v52 }
  0xa4   :  { %160 = vadd.xlane.f32.xlu2 %v159_v54 }
  0xab   :  { %166 = vadd.xlane.f32.xlu0 %v165_v60 }
  0xac   :  { %251 = vadd.xlane.f32.xlu2 %v250_v61 }
  0xb3   :  { %257 = vadd.xlane.f32.xlu0 %v256_v0 }
  0xb4   :  { %169 = vadd.xlane.f32.xlu2 %v168_v1  ;;  %v2742_v1 = vld [vmem:[%s3618_s2] ss:$0 sm:$0xff] }
  0xbb   :  { %124 = vadd.xlane.f32.xlu0 %v123_v3 }
 0x106   :  { %v246_v8 = vpop.xlane.xlu1 %245  ;;  %v240_v9 = vpop.xlane.xlu0 %239 }
 0x107   :  { %v280_v10 = vmul.f32 %v246_v8, %v2624_v20  ;;  %v278_v11 = vmul.f32 %v240_v9, %v2624_v20 }
 0x109   :  { %v2695_v12 = vadd.f32 1e-05, %v280_v10  ;;  %v294_v13 = vadd.f32 1e-05, %v278_v11  ;;  %v2755_v11 = vld [vmem:[#allocation2 + $0x8] sm:$0xff] }
 0x10b   :  { %2200 = vrsqrt.f32 %v2695_v12  ;;  %vm352_vm3 = vweird.f32 %v294_v13  ;;  %vm372_vm5 = vweird.f32 %v2695_v12 }
 0x10c   :  { %2202 = vrsqrt.f32 %v294_v13 }
 0x10e   :  { %v164_v14 = vpop.xlane.xlu1 %163  ;;  %v158_v15 = vpop.xlane.xlu0 %157 }
 0x10f   :  { %v191_v16 = vmul.f32 %v2624_v20, %v164_v14  ;;  %v243_v17 = vpop.xlane.xlu2 %242  ;;  %v189_v18 = vmul.f32 %v2624_v20, %v158_v15 }
 0x110   :  { %v279_v19 = vmul.f32 %v243_v17, %v2624_v20 }
 0x111   :  { %v2701_v21 = vpop.eup %2200  ;;  %v2704_v22 = vsub.f32 %v2643_v39, %v189_v18  ;;  %v2711_v29 = vsub.f32 %v2639_v36, %v191_v16  ;;  %v129_v16 = vsel %vm122_vm0, %v2745_v7, 0.0 }
 0x112   :  { %v2203_v23 = vpop.eup %2202  ;;  %v2706_v24 = vadd.f32 1e-05, %v279_v19  ;;  %v367_v25 = vmul.f32 %v2701_v21, %v2695_v12  ;;  %vm373_vm6 = vweird.f32 %v2701_v21 }
 0x113   :  { %v347_v28 = vmul.f32 %v2203_v23, %v294_v13  ;;  %v221_v30 = vmul.f32 %v2704_v22, %v2704_v22  ;;  %v223_v36 = vmul.f32 %v2711_v29, %v2711_v29  ;;  %vm353_vm2 = vweird.f32 %v2203_v23  ;;  %vm2768_vm9 = vmor %vm372_vm5, %vm373_vm6 }
 0x114   :  { %2204 = vrsqrt.f32 %v2706_v24  ;;  %v368_v35 = vmul.f32 %v2701_v21, %v367_v25  ;;  %vm354_vm4 = vmor %vm352_vm3, %vm353_vm2  ;;  %vm362_vm8 = vweird.f32 %v2706_v24 }
 0x115   :  { %v348_v31 = vmul.f32 %v2203_v23, %v347_v28  ;;  %v259_v32 = vsel %vm122_vm0, %v221_v30, 0.0  ;;  %v265_v54 = vsel %vm122_vm0, %v223_v36, 0.0 }
 0x116   :  { %v255_v33 = vpop.xlane.xlu1 %254  ;;  %260 = vadd.xlane.f32.xlu1 %v259_v32  ;;  %v249_v34 = vpop.xlane.xlu0 %248  ;;  %v369_v49 = vmul.f32 0.5, %v368_v35  ;;  %v2783_v32 = vld [vmem:[#allocation2 + $0x18] sm:$0xff] }
 0x117   :  { %v349_v37 = vmul.f32 0.5, %v348_v31  ;;  %v161_v38 = vpop.xlane.xlu2 %160  ;;  %v281_v39 = vmul.f32 %v249_v34, %v2624_v20  ;;  %v283_v45 = vmul.f32 %v255_v33, %v2624_v20 }
 0x118   :  { %v190_v41 = vmul.f32 %v2624_v20, %v161_v38  ;;  %v370_v3 = vsub.f32 1.5, %v369_v49 }
 0x119   :  { %v350_v44 = vsub.f32 1.5, %v349_v37  ;;  %v2723_v46 = vadd.f32 1e-05, %v281_v39  ;;  %v2735_v60 = vadd.f32 1e-05, %v283_v45 }
 0x11a   :  { %v2205_v47 = vpop.eup %2204  ;;  %v2726_v48 = vsub.f32 %v2663_v50, %v190_v41  ;;  %v371_v17 = vmul.f32 %v2701_v21, %v370_v3 }
 0x11b   :  { %v351_v51 = vmul.f32 %v2203_v23, %v350_v44  ;;  %v357_v52 = vmul.f32 %v2205_v47, %v2706_v24  ;;  %2206 = vrsqrt.f32 %v2723_v46  ;;  %vm363_vm7 = vweird.f32 %v2205_v47 }
 0x11c   :  { %v222_v55 = vmul.f32 %v2726_v48, %v2726_v48  ;;  %2208 = vrsqrt.f32 %v2735_v60  ;;  %vm364_vm10 = vmor %vm362_vm8, %vm363_vm7  ;;  %v126_v24 = vsel %vm122_vm0, %v2755_v11, 0.0  ;;  %v375_v38 = vsel %vm2768_vm9, %v2701_v21, %v371_v17 }
 0x11d   :  { %v358_v58 = vmul.f32 %v2205_v47, %v357_v52  ;;  %v355_v61 = vsel %vm354_vm4, %v2203_v23, %v351_v51  ;;  %vm382_vm11 = vweird.f32 %v2723_v46  ;;  %v132_v44 = vsel %vm122_vm0, %v2783_v32, 0.0 }
 0x11e   :  { %v262_v50 = vsel %vm122_vm0, %v222_v55, 0.0  ;;  %266 = vadd.xlane.f32.xlu1 %v265_v54  ;;  %v167_v62 = vpop.xlane.xlu0 %166  ;;  %v470_v0 = vmul.f32 %v355_v61, %v2630_v27  ;;  %v472_v51 = vmul.f32 %v375_v38, %v2628_v26  ;;  %vm402_vm2 = vweird.f32 %v2735_v60 }
 0x11f   :  { %v359_v4 = vmul.f32 0.5, %v358_v58  ;;  %263 = vadd.xlane.f32.xlu2 %v262_v50  ;;  %v252_v5 = vpop.xlane.xlu2 %251  ;;  %v192_v6 = vmul.f32 %v2624_v20, %v167_v62 }
 0x120   :  { %v282_v8 = vmul.f32 %v252_v5, %v2624_v20  ;;  %v490_v27 = vmul.f32 %v2733_v56, %v470_v0  ;;  %v492_v50 = vmul.f32 %v2733_v56, %v472_v51 }
 0x121   :  { %v360_v9 = vsub.f32 1.5, %v359_v4  ;;  %v2753_v10 = vsub.f32 %v2673_v57, %v192_v6  ;;  %v2757_v13 = vpop.eup %2206 }
 0x122   :  { %v2760_v14 = vadd.f32 1e-05, %v282_v8  ;;  %v510_v15 = vadd.f32 %v2742_v1, %v490_v27  ;;  %v377_v19 = vmul.f32 %v2757_v13, %v2723_v46  ;;  %v2785_v33 = vpop.eup %2208  ;;  %vm383_vm12 = vweird.f32 %v2757_v13 }
 0x123   :  { %v361_v18 = vmul.f32 %v2205_v47, %v360_v9  ;;  %v224_v23 = vmul.f32 %v2753_v10, %v2753_v10  ;;  %vm2811_vm13 = vmor %vm382_vm11, %vm383_vm12  ;;  %v512_v8 = vadd.f32 %v2742_v1, %v492_v50  ;;  %vm403_vm3 = vweird.f32 %v2785_v33 }
 0x124   :  { %2210 = vrsqrt.f32 %v2760_v14  ;;  %1929 = vmatmul.msk.f32.vlgmr.msra.gmra.mxu2 %vm122_vm0, %v510_v15  ;;  %v378_v12 = vmul.f32 %v2757_v13, %v377_v19  ;;  %vm392_vm14 = vweird.f32 %v2760_v14  ;;  %vm404_vm4 = vmor %vm402_vm2, %vm403_vm3 }
 0x125   :  { %v268_v25 = vsel %vm122_vm0, %v224_v23, 0.0  ;;  %v365_v28 = vsel %vm364_vm10, %v2205_v47, %v361_v18  ;;  %v397_v47 = vmul.f32 %v2785_v33, %v2735_v60 }
 0x126   :  { %v258_v30 = vpop.xlane.xlu0 %257  ;;  %130 = vadd.xlane.f32.xlu1 %v129_v16  ;;  %269 = vadd.xlane.f32.xlu0 %v268_v25  ;;  %v471_v31 = vmul.f32 %v365_v28, %v2645_v40  ;;  %v379_v34 = vmul.f32 0.5, %v378_v12 }
 0x127   :  { %v170_v35 = vpop.xlane.xlu2 %169  ;;  %v284_v37 = vmul.f32 %v258_v30, %v2624_v20  ;;  %127 = vadd.xlane.f32.xlu2 %v126_v24  ;;  %v398_v62 = vmul.f32 %v2785_v33, %v397_v47 }
 0x128   :  { %v193_v39 = vmul.f32 %v2624_v20, %v170_v35  ;;  %v491_v36 = vmul.f32 %v2733_v56, %v471_v31  ;;  %v380_v41 = vsub.f32 1.5, %v379_v34 }
 0x129   :  { %v300_v40 = vadd.f32 1e-05, %v284_v37  ;;  %v399_v9 = vmul.f32 0.5, %v398_v62 }
 0x12a   :  { %v2211_v45 = vpop.eup %2210  ;;  %v2799_v49 = vsub.f32 %v2684_v63, %v193_v39  ;;  %v511_v21 = vadd.f32 %v2742_v1, %v491_v36  ;;  %v381_v52 = vmul.f32 %v2757_v13, %v380_v41 }
 0x12b   :  { %v387_v54 = vmul.f32 %v2211_v45, %v2760_v14  ;;  %2212 = vrsqrt.f32 %v300_v40  ;;  %vm393_vm15 = vweird.f32 %v2211_v45  ;;  %vm412_vm5 = vweird.f32 %v300_v40 }
 0x12c   :  { %1930 = vmatmul.msk.f32.gmra.mxu2 %vm122_vm0, %v511_v21  ;;  %v225_v55 = vmul.f32 %v2799_v49, %v2799_v49  ;;  %v385_v46 = vsel %vm2811_vm13, %v2757_v13, %v381_v52  ;;  %vm394_vm1 = vmor %vm392_vm14, %vm393_vm15 }
 0x12d   :  { %v388_v58 = vmul.f32 %v2211_v45, %v387_v54  ;;  %v473_v27 = vmul.f32 %v385_v46, %v2651_v43 }
 0x12e   :  { %v271_v26 = vsel %vm122_vm0, %v225_v55, 0.0  ;;  %133 = vadd.xlane.f32.xlu0 %v132_v44  ;;  %v125_v61 = vpop.xlane.xlu0 %124 }
 0x12f   :  { %v389_v0 = vmul.f32 0.5, %v388_v58  ;;  %272 = vadd.xlane.f32.xlu2 %v271_v26  ;;  %v178_v3 = vmul.f32 %v2624_v20, %v125_v61  ;;  %v493_v14 = vmul.f32 %v2733_v56, %v473_v27 }
 0x131   :  { %v2213_v4 = vpop.eup %2212  ;;  %v390_v5 = vsub.f32 1.5, %v389_v0  ;;  %v2824_v6 = vsub.f32 %v2689_v2, %v178_v3  ;;  %v400_v2 = vsub.f32 1.5, %v399_v9  ;;  %v513_v43 = vadd.f32 %v2742_v1, %v493_v14 }
 0x132   :  { %v407_v16 = vmul.f32 %v2213_v4, %v300_v40  ;;  %vm413_vm6 = vweird.f32 %v2213_v4 }
 0x133   :  { %v391_v15 = vmul.f32 %v2211_v45, %v390_v5  ;;  %v210_v17 = vmul.f32 %v2824_v6, %v2824_v6  ;;  %v401_v23 = vmul.f32 %v2785_v33, %v400_v2  ;;  %vm414_vm7 = vmor %vm412_vm5, %vm413_vm6 }
 0x134   :  { %1931 = vmatmul.msk.f32.gmra.mxu2 %vm122_vm0, %v512_v8  ;;  %v408_v57 = vmul.f32 %v2213_v4, %v407_v16 }
 0x135   :  { %v226_v13 = vsel %vm122_vm0, %v210_v17, 0.0  ;;  %v395_v18 = vsel %vm394_vm1, %v2211_v45, %v391_v15  ;;  %v405_v28 = vsel %vm404_vm4, %v2785_v33, %v401_v23 }
 0x136   :  { %227 = vadd.xlane.f32.xlu1 %v226_v13  ;;  %v474_v19 = vmul.f32 %v395_v18, %v2668_v53  ;;  %v409_v24 = vmul.f32 0.5, %v408_v57  ;;  %v475_v30 = vmul.f32 %v405_v28, %v2649_v42 }
 0x138   :  { %v494_v12 = vmul.f32 %v2733_v56, %v474_v19  ;;  %v410_v25 = vsub.f32 1.5, %v409_v24  ;;  %v495_v53 = vmul.f32 %v2733_v56, %v475_v30 }
 0x13a   :  { %v514_v60 = vadd.f32 %v2742_v1, %v494_v12  ;;  %v411_v31 = vmul.f32 %v2213_v4, %v410_v25  ;;  %v515_v35 = vadd.f32 %v2742_v1, %v495_v53 }
 0x13c   :  { %1932 = vmatmul.msk.f32.gmra.mxu2 %vm122_vm0, %v513_v43  ;;  %v415_v34 = vsel %vm414_vm7, %v2213_v4, %v411_v31 }
 0x13d   :  { %v476_v37 = vmul.f32 %v415_v34, %v2677_v59 }
 0x13f   :  { %v496_v33 = vmul.f32 %v2733_v56, %v476_v37 }
 0x141   :  { %v516_v38 = vadd.f32 %v2742_v1, %v496_v33 }
 0x144   :  { %1933 = vmatmul.msk.f32.gmra.mxu2 %vm122_vm0, %v514_v60 }
 0x14c   :  { %1934 = vmatmul.msk.f32.gmra.mxu2 %vm122_vm0, %v515_v35 }
 0x154   :  { %1935 = vmatmul.msk.f32.gmra.mxu2 %vm122_vm0, %v516_v38 }
 0x189   :  { %v261_v42 = vpop.xlane.xlu1 %260 }
 0x18a   :  { %v285_v39 = vmul.f32 %v261_v42, %v2624_v20 }
 0x18c   :  { %v301_v36 = vadd.f32 1e-05, %v285_v39 }
 0x18e   :  { %2214 = vrsqrt.f32 %v301_v36  ;;  %vm422_vm8 = vweird.f32 %v301_v36 }
 0x191   :  { %v267_v41 = vpop.xlane.xlu1 %266 }
 0x192   :  { %v264_v40 = vpop.xlane.xlu2 %263  ;;  %v287_v44 = vmul.f32 %v267_v41, %v2624_v20 }
 0x193   :  { %v286_v45 = vmul.f32 %v264_v40, %v2624_v20 }
 0x194   :  { %v2215_v59 = vpop.eup %2214  ;;  %v2854_v47 = vadd.f32 1e-05, %v287_v44 }
 0x195   :  { %v417_v21 = vmul.f32 %v2215_v59, %v301_v36  ;;  %v302_v51 = vadd.f32 1e-05, %v286_v45  ;;  %vm423_vm9 = vweird.f32 %v2215_v59 }
 0x196   :  { %2216 = vrsqrt.f32 %v2854_v47  ;;  %vm424_vm10 = vmor %vm422_vm8, %vm423_vm9  ;;  %vm442_vm13 = vweird.f32 %v2854_v47 }
 0x197   :  { %v418_v52 = vmul.f32 %v2215_v59, %v417_v21  ;;  %2218 = vrsqrt.f32 %v302_v51  ;;  %vm432_vm12 = vweird.f32 %v302_v51 }
 0x199   :  { %v419_v54 = vmul.f32 0.5, %v418_v52  ;;  %v131_v55 = vpop.xlane.xlu1 %130  ;;  %v270_v58 = vpop.xlane.xlu0 %269 }
 0x19a   :  { %v180_v63 = vmul.f32 %v2624_v20, %v131_v55  ;;  %v128_v26 = vpop.xlane.xlu2 %127  ;;  %v288_v61 = vmul.f32 %v270_v58, %v2624_v20 }
 0x19b   :  { %v420_v50 = vsub.f32 1.5, %v419_v54  ;;  %v179_v62 = vmul.f32 %v2624_v20, %v128_v26 }
 0x19c   :  { %v2217_v0 = vpop.eup %2216  ;;  %v2861_v3 = vsub.f32 %v2745_v7, %v180_v63  ;;  %v2863_v46 = vadd.f32 1e-05, %v288_v61 }
 0x19d   :  { %v2219_v4 = vpop.eup %2218  ;;  %v421_v5 = vmul.f32 %v2215_v59, %v420_v50  ;;  %v437_v8 = vmul.f32 %v2217_v0, %v2854_v47  ;;  %v2867_v27 = vsub.f32 %v2755_v11, %v179_v62  ;;  %vm443_vm14 = vweird.f32 %v2217_v0 }
 0x19e   :  { %v427_v9 = vmul.f32 %v2219_v4, %v302_v51  ;;  %2220 = vrsqrt.f32 %v2863_v46  ;;  %v212_v7 = vmul.f32 %v2861_v3, %v2861_v3  ;;  %vm433_vm11 = vweird.f32 %v2219_v4  ;;  %vm444_vm1 = vmor %vm442_vm13, %vm443_vm14 }
 0x19f   :  { %v438_v15 = vmul.f32 %v2217_v0, %v437_v8  ;;  %v211_v16 = vmul.f32 %v2867_v27, %v2867_v27  ;;  %v425_v17 = vsel %vm424_vm10, %v2215_v59, %v421_v5  ;;  %vm434_vm15 = vmor %vm432_vm12, %vm433_vm11  ;;  %vm452_vm2 = vweird.f32 %v2863_v46 }
 0x1a0   :  { %v428_v13 = vmul.f32 %v2219_v4, %v427_v9  ;;  %v477_v14 = vmul.f32 %v425_v17, %v2704_v22  ;;  %v232_v11 = vsel %vm122_vm0, %v212_v7, 0.0 }
 0x1a1   :  { %v439_v2 = vmul.f32 0.5, %v438_v15  ;;  %v229_v57 = vsel %vm122_vm0, %v211_v16, 0.0  ;;  %v134_v18 = vpop.xlane.xlu0 %133  ;;  %233 = vadd.xlane.f32.xlu0 %v232_v11 }
 0x1a2   :  { %v429_v43 = vmul.f32 0.5, %v428_v13  ;;  %230 = vadd.xlane.f32.xlu2 %v229_v57  ;;  %v273_v19 = vpop.xlane.xlu2 %272  ;;  %v181_v23 = vmul.f32 %v2624_v20, %v134_v18  ;;  %v497_v24 = vmul.f32 %v2733_v56, %v477_v14 }
 0x1a3   :  { %v440_v12 = vsub.f32 1.5, %v439_v2  ;;  %v289_v25 = vmul.f32 %v273_v19, %v2624_v20 }
 0x1a4   :  { %v2221_v28 = vpop.eup %2220  ;;  %v430_v60 = vsub.f32 1.5, %v429_v43  ;;  %v2881_v22 = vsub.f32 %v2783_v32, %v181_v23  ;;  %v517_v30 = vadd.f32 %v2742_v1, %v497_v24  ;;  %v2921_v23 = vld [vmem:[%s3620_s4] ss:$0 sm:$0xff]  ;;  %s2537_s4 = smov 112  }
 0x1a5   :  { %v447_v31 = vmul.f32 %v2221_v28, %v2863_v46  ;;  %v305_v53 = vadd.f32 1e-05, %v289_v25  ;;  %v441_v35 = vmul.f32 %v2217_v0, %v440_v12  ;;  %vm453_vm3 = vweird.f32 %v2221_v28 }
 0x1a6   :  { %v431_v34 = vmul.f32 %v2219_v4, %v430_v60  ;;  %1936 = vmatmul.msk.f32.gmra.mxu2 %vm122_vm0, %v517_v30  ;;  %v213_v37 = vmul.f32 %v2881_v22, %v2881_v22  ;;  %vm454_vm4 = vmor %vm452_vm2, %vm453_vm3 }
 0x1a7   :  { %v448_v33 = vmul.f32 %v2221_v28, %v447_v31  ;;  %2222 = vrsqrt.f32 %v305_v53  ;;  %v2889_v32 = vpop.f32.mrf.mxu2  ;;  %v445_v44 = vsel %vm444_vm1, %v2217_v0, %v441_v35  ;;  %vm462_vm5 = vweird.f32 %v305_v53 }
 0x1a8   :  { %v235_v38 = vsel %vm122_vm0, %v213_v37, 0.0  ;;  %v435_v42 = vsel %vm434_vm15, %v2219_v4, %v431_v34  ;;  %v479_v52 = vmul.f32 %v445_v44, %v2711_v29 }
 0x1a9   :  { %v449_v39 = vmul.f32 0.5, %v448_v33  ;;  %v228_v36 = vpop.xlane.xlu1 %227  ;;  %236 = vadd.xlane.f32.xlu1 %v235_v38  ;;  %v478_v41 = vmul.f32 %v435_v42, %v2726_v48 }
 0x1aa   :  { %v274_v40 = vmul.f32 %v228_v36, %v2624_v20  ;;  %v499_v63 = vmul.f32 %v2733_v56, %v479_v52 }
 0x1ab   :  { %v450_v45 = vsub.f32 1.5, %v449_v39  ;;  %v498_v59 = vmul.f32 %v2733_v56, %v478_v41 }
 0x1ac   :  { %v290_v47 = vadd.f32 1e-05, %v274_v40  ;;  %v519_v29 = vadd.f32 %v2742_v1, %v499_v63 }
 0x1ad   :  { %v2223_v21 = vpop.eup %2222  ;;  %v518_v51 = vadd.f32 %v2742_v1, %v498_v59  ;;  %v451_v54 = vmul.f32 %v2221_v28, %v450_v45 }
 0x1ae   :  { %v457_v55 = vmul.f32 %v2223_v21, %v305_v53  ;;  %2224 = vrsqrt.f32 %v290_v47  ;;  %vm463_vm6 = vweird.f32 %v2223_v21  ;;  %vm312_vm8 = vweird.f32 %v290_v47 }
 0x1af   :  { %v2898_v58 = vpop.f32.mrf.mxu2  ;;  %1937 = vmatmul.msk.f32.gmra.mxu2 %vm122_vm0, %v518_v51  ;;  %v455_v26 = vsel %vm454_vm4, %v2221_v28, %v451_v54  ;;  %vm464_vm7 = vmor %vm462_vm5, %vm463_vm6  ;;  %vm771_vm5 = vcmask 64512   ;;  %vm1758_vm6 = vcmask 130048  }
 0x1b0   :  { %v458_v48 = vmul.f32 %v2223_v21, %v457_v55  ;;  %v480_v46 = vmul.f32 %v455_v26, %v2753_v10 }
 0x1b2   :  { %v459_v61 = vmul.f32 0.5, %v458_v48  ;;  %v500_v15 = vmul.f32 %v2733_v56, %v480_v46 }
 0x1b4   :  { %v2225_v50 = vpop.eup %2224  ;;  %v460_v62 = vsub.f32 1.5, %v459_v61  ;;  %v520_v13 = vadd.f32 %v2742_v1, %v500_v15 }
 0x1b5   :  { %v307_v0 = vmul.f32 %v2225_v50, %v290_v47  ;;  %vm313_vm9 = vweird.f32 %v2225_v50 }
 0x1b6   :  { %v461_v4 = vmul.f32 %v2223_v21, %v460_v62  ;;  %vm314_vm10 = vmor %vm312_vm8, %vm313_vm9 }
 0x1b7   :  { %v308_v5 = vmul.f32 %v2225_v50, %v307_v0  ;;  %v2904_v8 = vpop.f32.mrf.mxu2  ;;  %1938 = vmatmul.msk.f32.gmra.mxu2 %vm122_vm0, %v519_v29 }
 0x1b8   :  { %v465_v16 = vsel %vm464_vm7, %v2223_v21, %v461_v4 }
 0x1b9   :  { %v309_v9 = vmul.f32 0.5, %v308_v5  ;;  %v481_v10 = vmul.f32 %v465_v16, %v2799_v49 }
 0x1bb   :  { %v310_v7 = vsub.f32 1.5, %v309_v9  ;;  %v501_v11 = vmul.f32 %v2733_v56, %v481_v10 }
 0x1bd   :  { %v311_v17 = vmul.f32 %v2225_v50, %v310_v7  ;;  %v521_v19 = vadd.f32 %v2742_v1, %v501_v11 }
 0x1bf   :  { %v2910_v14 = vpop.f32.mrf.mxu2  ;;  %1939 = vmatmul.msk.f32.gmra.mxu2 %vm122_vm0, %v520_v13  ;;  %v315_v2 = vsel %vm314_vm10, %v2225_v50, %v311_v17 }
 0x1c0   :  { %v466_v57 = vmul.f32 %v315_v2, %v2824_v6  ;;  %v2981_v11 = vadd.f32 %v2921_v23, %v2910_v14  ;;  %v3006_v14 = vadd.f32 %v2921_v23, %v2904_v8  ;;  %v3022_v8 = vadd.f32 %v2921_v23, %v2889_v32 }
 0x1c2   :  { %v486_v18 = vmul.f32 %v2733_v56, %v466_v57 }
 0x1c4   :  { %v506_v43 = vadd.f32 %v2742_v1, %v486_v18  ;;  %v3014_v18 = vadd.f32 %v2921_v23, %v2898_v58 }
 0x1c6   :  { %1925 = vmatmul.msk.f32.vlgmr.msra.gmra.mxu0 %vm122_vm0, %v506_v43 }
 0x1c7   :  { %v619_v49 = vpop.f32.mrf.mxu2  ;;  %1940 = vmatmul.msk.f32.gmra.mxu2 %vm122_vm0, %v521_v19 }
 0x1c8   :  { %v2926_v6 = vadd.f32 %v2921_v23, %v619_v49 }
 0x1ca   :  { %675 = vrot.lane.b32.xlu0 %v2926_v6, %s2536_s30 }
 0x1cf   :  { %v622_v24 = vpop.f32.mrf.mxu2 }
 0x1d0   :  { %v2931_v12 = vadd.f32 %v2921_v23, %v622_v24 }
 0x1d2   :  { %677 = vrot.lane.b32.xlu2 %v2931_v12, %s2536_s30 }
 0x1d7   :  { %v625_v25 = vpop.f32.mrf.mxu2 }
 0x1d8   :  { %v2936_v28 = vadd.f32 %v2921_v23, %v625_v25 }
 0x1da   :  { %679 = vrot.lane.b32.xlu1 %v2936_v28, %s2536_s30 }
 0x1e2   :  { %759 = vrot.lane.b32.xlu1 %v2936_v28, %s2537_s4 }
 0x214   :  { %v234_v30 = vpop.xlane.xlu0 %233 }
 0x215   :  { %v231_v60 = vpop.xlane.xlu2 %230  ;;  %v276_v53 = vmul.f32 %v234_v30, %v2624_v20 }
 0x216   :  { %v275_v31 = vmul.f32 %v231_v60, %v2624_v20 }
 0x217   :  { %v292_v35 = vadd.f32 1e-05, %v276_v53 }
 0x218   :  { %v291_v34 = vadd.f32 1e-05, %v275_v31 }
 0x219   :  { %vm332_vm13 = vweird.f32 %v292_v35 }
 0x21a   :  { %2226 = vrsqrt.f32 %v291_v34  ;;  %vm322_vm12 = vweird.f32 %v291_v34 }
 0x21b   :  { %2228 = vrsqrt.f32 %v292_v35 }
 0x21c   :  { %v237_v37 = vpop.xlane.xlu1 %236 }
 0x21d   :  { %v277_v33 = vmul.f32 %v237_v37, %v2624_v20 }
 0x21f   :  { %v293_v38 = vadd.f32 1e-05, %v277_v33 }
 0x220   :  { %v2227_v42 = vpop.eup %2226 }
 0x221   :  { %v2229_v39 = vpop.eup %2228  ;;  %v317_v36 = vmul.f32 %v2227_v42, %v291_v34  ;;  %2230 = vrsqrt.f32 %v293_v38  ;;  %vm323_vm11 = vweird.f32 %v2227_v42  ;;  %vm342_vm2 = vweird.f32 %v293_v38 }
 0x222   :  { %v327_v41 = vmul.f32 %v2229_v39, %v292_v35  ;;  %vm333_vm14 = vweird.f32 %v2229_v39  ;;  %vm324_vm15 = vmor %vm322_vm12, %vm323_vm11 }
 0x223   :  { %v318_v40 = vmul.f32 %v2227_v42, %v317_v36  ;;  %vm334_vm1 = vmor %vm332_vm13, %vm333_vm14 }
 0x224   :  { %v328_v44 = vmul.f32 %v2229_v39, %v327_v41 }
 0x225   :  { %v319_v45 = vmul.f32 0.5, %v318_v40 }
 0x226   :  { %v329_v59 = vmul.f32 0.5, %v328_v44 }
 0x227   :  { %v2231_v47 = vpop.eup %2230  ;;  %v320_v21 = vsub.f32 1.5, %v319_v45 }
 0x228   :  { %v330_v51 = vsub.f32 1.5, %v329_v59  ;;  %v337_v52 = vmul.f32 %v2231_v47, %v293_v38  ;;  %vm343_vm3 = vweird.f32 %v2231_v47 }
 0x229   :  { %v321_v54 = vmul.f32 %v2227_v42, %v320_v21  ;;  %v628_v20 = vpop.f32.mrf.mxu2  ;;  %vm344_vm4 = vmor %vm342_vm2, %vm343_vm3 }
 0x22a   :  { %v331_v55 = vmul.f32 %v2229_v39, %v330_v51  ;;  %v338_v48 = vmul.f32 %v2231_v47, %v337_v52  ;;  %v2946_v63 = vadd.f32 %v2921_v23, %v628_v20 }
 0x22b   :  { %v325_v26 = vsel %vm324_vm15, %v2227_v42, %v321_v54 }
 0x22c   :  { %v339_v61 = vmul.f32 0.5, %v338_v48  ;;  %681 = vrot.lane.b32.xlu0 %v2946_v63, %s2536_s30  ;;  %v467_v50 = vmul.f32 %v325_v26, %v2867_v27  ;;  %v335_v62 = vsel %vm334_vm1, %v2229_v39, %v331_v55  ;;  %v3028_v43 = vpop.permute.xlu2 %677 }
 0x22d   :  { %v468_v4 = vmul.f32 %v335_v62, %v2861_v3 }
 0x22e   :  { %v340_v0 = vsub.f32 1.5, %v339_v61  ;;  %v487_v29 = vmul.f32 %v2733_v56, %v467_v50 }
 0x22f   :  { %v488_v27 = vmul.f32 %v2733_v56, %v468_v4 }
 0x230   :  { %v507_v46 = vadd.f32 %v2742_v1, %v487_v29  ;;  %v341_v5 = vmul.f32 %v2231_v47, %v340_v0 }
 0x231   :  { %v508_v3 = vadd.f32 %v2742_v1, %v488_v27 }
 0x232   :  { %1926 = vmatmul.msk.f32.gmra.mxu0 %vm122_vm0, %v507_v46  ;;  %v631_v9 = vpop.f32.mrf.mxu2  ;;  %v345_v16 = vsel %vm344_vm4, %v2231_v47, %v341_v5 }
 0x233   :  { %v2956_v15 = vadd.f32 %v2921_v23, %v631_v9  ;;  %v469_v7 = vmul.f32 %v345_v16, %v2881_v22  ;;  %v2101_v16 = vpack.i.bf16 %v2926_v6, %v2931_v12 }
 0x234   :  { %761 = vrot.lane.b32.xlu0 %v2946_v63, %s2537_s4 }
 0x235   :  { %683 = vrot.lane.b32.xlu2 %v2956_v15, %s2536_s30  ;;  %v489_v10 = vmul.f32 %v2733_v56, %v469_v7  ;;  %v2091_v7 = vpack.i.bf16 %v2936_v28, %v2946_v63 }
 0x237   :  { %v509_v2 = vadd.f32 %v2742_v1, %v489_v10  ;;  %v2116_v10 = vpack.i.bf16 %v3006_v14, %v2981_v11 }
 0x23a   :  { %1927 = vmatmul.msk.f32.gmra.mxu0 %vm122_vm0, %v508_v3  ;;  %v634_v17 = vpop.f32.mrf.mxu2 }
 0x23b   :  { %v2967_v13 = vadd.f32 %v2921_v23, %v634_v17 }
 0x23c   :  { %v3034_v49 = vpop.permute.xlu0 %675 }
 0x23d   :  { %763 = vrot.lane.b32.xlu2 %v2956_v15, %s2537_s4  ;;  %765 = vrot.lane.b32.xlu1 %v2967_v13, %s2537_s4  ;;  %v2086_v4 = vpack.i.bf16 %v2956_v15, %v2967_v13 }
 0x242   :  { %1928 = vmatmul.msk.f32.gmra.mxu0 %vm122_vm0, %v509_v2  ;;  %v637_v57 = vpop.f32.mrf.mxu2 }
 0x243   :  { %v2977_v22 = vadd.f32 %v2921_v23, %v637_v57  ;;  %v595_v60 = vpop.f32.mrf.mxu0 }
 0x244   :  { %v3088_v21 = vadd.f32 %v2921_v23, %v595_v60 }
 0x245   :  { %685 = vrot.lane.b32.xlu2 %v2967_v13, %s2536_s30  ;;  %687 = vrot.lane.b32.xlu0 %v2977_v22, %s2536_s30 }
 0x246   :  { %673 = vrot.lane.b32.xlu1 %v2981_v11, %s2536_s30 }
 0x24a   :  { %v640_v56 = vpop.f32.mrf.mxu2 }
 0x24b   :  { %v2990_v1 = vadd.f32 %v2921_v23, %v640_v56 }
 0x24c   :  { %v3036_v24 = vpop.permute.xlu1 %679 }
 0x24d   :  { %689 = vrot.lane.b32.xlu2 %v2990_v1, %s2536_s30  ;;  %767 = vrot.lane.b32.xlu0 %v2977_v22, %s2537_s4  ;;  %v2071_v0 = vpack.i.bf16 %v2977_v22, %v2990_v1 }
 0x24e   :  { %769 = vrot.lane.b32.xlu1 %v2990_v1, %s2537_s4 }
 0x254   :  { %v760_v30 = vpop.permute.xlu1 %759 }
 0x255   :  { %757 = vrot.lane.b32.xlu2 %v2931_v12, %s2537_s4  ;;  %755 = vrot.lane.b32.xlu0 %v2926_v6, %s2537_s4 }
 0x256   :  { %753 = vrot.lane.b32.xlu1 %v2981_v11, %s2537_s4 }
 0x25d   :  { %671 = vrot.lane.b32.xlu2 %v3006_v14, %s2536_s30 }
 0x25e   :  { %751 = vrot.lane.b32.xlu1 %v3006_v14, %s2537_s4 }
 0x265   :  { %669 = vrot.lane.b32.xlu2 %v3014_v18, %s2536_s30 }
 0x266   :  { %749 = vrot.lane.b32.xlu1 %v3014_v18, %s2537_s4 }
 0x26d   :  { %667 = vrot.lane.b32.xlu2 %v3022_v8, %s2536_s30 }
 0x26e   :  { %747 = vrot.lane.b32.xlu1 %v3022_v8, %s2537_s4 }
 0x28f   :  { %v3030_v58 = vpop.permute.xlu2 %683 }
 0x290   :  { %925 = vrot.lane.b32.xlu0 %v3030_v58, %s2537_s4 }
 0x297   :  { %v764_v19 = vpop.permute.xlu2 %763 }
 0x29e   :  { %v3042_v25 = vpop.permute.xlu0 %681 }
 0x29f   :  { %v3038_v32 = vpop.permute.xlu2 %685 }
 0x2a0   :  { %927 = vrot.lane.b32.xlu0 %v3038_v32, %s2537_s4 }
 0x2a6   :  { %v762_v53 = vpop.permute.xlu0 %761 }
 0x2a7   :  { %v3050_v42 = vpop.permute.xlu2 %689 }
 0x2af   :  { %v598_v31 = vpop.f32.mrf.mxu0  ;;  %v766_v34 = vpop.permute.xlu1 %765 }
 0x2b0   :  { %v758_v44 = vpop.permute.xlu2 %757  ;;  %v3075_v59 = vadd.f32 %v2921_v23, %v598_v31 }
 0x2b7   :  { %v601_v35 = vpop.f32.mrf.mxu0  ;;  %v3046_v33 = vpop.permute.xlu0 %687 }
 0x2b8   :  { %v3044_v37 = vpop.permute.xlu1 %673  ;;  %929 = vrot.lane.b32.xlu0 %v3046_v33, %s2537_s4  ;;  %v3064_v40 = vadd.f32 %v2921_v23, %v601_v35  ;;  %v3084_v47 = vpop.permute.xlu2 %671  ;;  %v2141_v35 = vpack.i.bf16 %v3088_v21, %v3075_v59 }
 0x2bf   :  { %v604_v38 = vpop.f32.mrf.mxu0  ;;  %v768_v41 = vpop.permute.xlu0 %767 }
 0x2c0   :  { %v770_v39 = vpop.permute.xlu1 %769  ;;  %v3053_v36 = vadd.f32 %v2921_v23, %v604_v38  ;;  %931 = vrot.lane.b32.xlu0 %v3050_v42, %s2537_s4  ;;  %v3098_v54 = vpop.permute.xlu2 %669 }
 0x2c1   :  { %1941 = vmatpush.xpose.msk.msra.mxu1 %vm771_vm5, %v770_v39 }
 0x2c2   :  { %745 = vrot.lane.b32.xlu1 %v3053_v36, %s2537_s4  ;;  %665 = vrot.lane.b32.xlu2 %v3053_v36, %s2536_s30  ;;  %v2136_v31 = vpack.i.bf16 %v3064_v40, %v3053_v36 }
 0x2c5   :  { %1942 = vmatpush.xpose.msk.msra.mxu1 %vm771_vm5, %v768_v41 }
 0x2c7   :  { %v756_v52 = vpop.permute.xlu0 %755 }
 0x2c8   :  { %923 = vrot.lane.b32.xlu0 %v3042_v25, %s2537_s4  ;;  %v754_v45 = vpop.permute.xlu1 %753  ;;  %v3108_v20 = vpop.permute.xlu2 %667 }
 0x2c9   :  { %1943 = vmatpush.xpose.msk.msra.mxu1 %vm771_vm5, %v766_v34 }
 0x2ca   :  { %743 = vrot.lane.b32.xlu1 %v3064_v40, %s2537_s4  ;;  %663 = vrot.lane.b32.xlu2 %v3064_v40, %s2536_s30 }
 0x2cd   :  { %1944 = vmatpush.xpose.msk.msra.mxu1 %vm771_vm5, %v764_v19  ;;  %v2126_v19 = vpack.i.bf16 %v3022_v8, %v3014_v18 }
 0x2d0   :  { %921 = vrot.lane.b32.xlu0 %v3036_v24, %s2537_s4  ;;  %v752_v51 = vpop.permute.xlu1 %751 }
 0x2d1   :  { %1945 = vmatpush.xpose.msk.msra.mxu1 %vm771_vm5, %v762_v53 }
 0x2d2   :  { %741 = vrot.lane.b32.xlu1 %v3075_v59, %s2537_s4  ;;  %661 = vrot.lane.b32.xlu2 %v3075_v59, %s2536_s30 }
 0x2d5   :  { %1946 = vmatpush.xpose.msk.msra.mxu1 %vm771_vm5, %v760_v30 }
 0x2d8   :  { %919 = vrot.lane.b32.xlu0 %v3028_v43, %s2537_s4  ;;  %v750_v23 = vpop.permute.xlu1 %749 }
 0x2d9   :  { %1947 = vmatpush.xpose.msk.msra.mxu1 %vm771_vm5, %v758_v44 }
 0x2da   :  { %659 = vrot.lane.b32.xlu2 %v3088_v21, %s2536_s30  ;;  %917 = vrot.lane.b32.xlu1 %v3034_v49, %s2537_s4 }
 0x2dd   :  { %1948 = vmatpush.xpose.msk.msra.mxu1 %vm771_vm5, %v756_v52 }
 0x2e0   :  { %915 = vrot.lane.b32.xlu0 %v3044_v37, %s2537_s4  ;;  %v748_v55 = vpop.permute.xlu1 %747 }
 0x2e1   :  { %1949 = vmatpush.xpose.msk.msra.mxu1 %vm771_vm5, %v754_v45 }
 0x2e2   :  { %739 = vrot.lane.b32.xlu2 %v3088_v21, %s2537_s4  ;;  %911 = vrot.lane.b32.xlu1 %v3098_v54, %s2537_s4 }
 0x2e5   :  { %1950 = vmatpush.xpose.msk.msra.mxu1 %vm771_vm5, %v752_v51 }
 0x2e8   :  { %909 = vrot.lane.b32.xlu0 %v3108_v20, %s2537_s4 }
 0x2e9   :  { %1951 = vmatpush.xpose.msk.msra.mxu1 %vm771_vm5, %v750_v23 }
 0x2ea   :  { %913 = vrot.lane.b32.xlu2 %v3084_v47, %s2537_s4 }
 0x2ed   :  { %1952 = vmatpush.xpose.msk.msra.mxu1 %vm771_vm5, %v748_v55 }
 0x302   :  { %v926_v48 = vpop.permute.xlu0 %925 }
 0x312   :  { %v928_v61 = vpop.permute.xlu0 %927 }
 0x31c   :  { %v3116_v26 = vpop.permute.xlu2 %665 }
 0x31d   :  { %907 = vrot.lane.b32.xlu2 %v3116_v26, %s2537_s4 }
 0x324   :  { %v3120_v50 = vpop.permute.xlu2 %663 }
 0x325   :  { %905 = vrot.lane.b32.xlu1 %v3120_v50, %s2537_s4 }
 0x32a   :  { %v930_v62 = vpop.permute.xlu0 %929 }
 0x32c   :  { %v3126_v29 = vpop.permute.xlu2 %661 }
 0x32d   :  { %2072 = vrot.lane.b32.xlu1 %v2071_v0, %s2538_s9  ;;  %903 = vrot.lane.b32.xlu0 %v3126_v29, %s2537_s4 }
 0x332   :  { %v932_v46 = vpop.permute.xlu0 %931 }
 0x333   :  { %1973 = vmatpush.xpose.msk.msrb.mxu2 %vm771_vm5, %v932_v46 }
 0x334   :  { %v746_v5 = vpop.permute.xlu1 %745  ;;  %v3134_v9 = vpop.permute.xlu2 %659 }
 0x335   :  { %901 = vrot.lane.b32.xlu2 %v3134_v9, %s2537_s4  ;;  %2087 = vrot.lane.b32.xlu1 %v2086_v4, %s2539_s10 }
 0x336   :  { %2077 = vrot.lane.b32.xlu0 %v2071_v0, %s2539_s10  ;;  %1953 = vmatpush.xpose.msk.msra.mxu1 %vm771_vm5, %v746_v5 }
 0x337   :  { %1974 = vmatpush.xpose.msk.msrb.mxu2 %vm771_vm5, %v930_v62 }
 0x33a   :  { %v924_v27 = vpop.permute.xlu0 %923 }
 0x33b   :  { %1975 = vmatpush.xpose.msk.msrb.mxu2 %vm771_vm5, %v928_v61 }
 0x33c   :  { %v744_v3 = vpop.permute.xlu1 %743  ;;  %v740_v57 = vpop.permute.xlu2 %739 }
 0x33d   :  { %2082 = vrot.lane.b32.xlu2 %v2086_v4, %s2538_s9  ;;  %2102 = vrot.lane.b32.xlu1 %v2101_v16, %s2538_s9 }
 0x33e   :  { %2092 = vrot.lane.b32.xlu0 %v2091_v7, %s2538_s9  ;;  %1954 = vmatpush.xpose.msk.msra.mxu1 %vm771_vm5, %v744_v3 }
 0x33f   :  { %1976 = vmatpush.xpose.msk.msrb.mxu2 %vm771_vm5, %v926_v48 }
 0x342   :  { %v922_v17 = vpop.permute.xlu0 %921 }
 0x343   :  { %1977 = vmatpush.xpose.msk.msrb.mxu2 %vm771_vm5, %v924_v27  ;;  %v3232_v27 = vld [vmem:[#allocation10 + $0x8] sm:$0xff] }
 0x344   :  { %v742_v2 = vpop.permute.xlu1 %741  ;;  %v914_v53 = vpop.permute.xlu2 %913 }
 0x345   :  { %2097 = vrot.lane.b32.xlu2 %v2091_v7, %s2539_s10  ;;  %2117 = vrot.lane.b32.xlu1 %v2116_v10, %s2539_s10 }
 0x346   :  { %2107 = vrot.lane.b32.xlu0 %v2101_v16, %s2539_s10  ;;  %1955 = vmatpush.xpose.msk.msra.mxu1 %vm771_vm5, %v742_v2  ;;  %v725_v2 = vld [vmem:[#allocation10 + $0x10] sm:$0xff] }
 0x347   :  { %1978 = vmatpush.xpose.msk.msrb.mxu2 %vm771_vm5, %v922_v17 }
 0x34a   :  { %1956 = vmatpush.xpose.msk.msra.mxu1 %vm771_vm5, %v740_v57  ;;  %v920_v56 = vpop.permute.xlu0 %919 }
 0x34b   :  { %1979 = vmatpush.xpose.msk.msrb.mxu2 %vm771_vm5, %v920_v56 }
 0x34c   :  { %v918_v60 = vpop.permute.xlu1 %917 }
 0x34d   :  { %1957 = vmatmul.msk.f32.vlgmr.msra.gmra.mxu1 %vm771_vm5, %v3088_v21  ;;  %2112 = vrot.lane.b32.xlu2 %v2116_v10, %s2538_s9 }
 0x34e   :  { %2127 = vrot.lane.b32.xlu1 %v2126_v19, %s2539_s10 }
 0x34f   :  { %1980 = vmatpush.xpose.msk.msrb.mxu2 %vm771_vm5, %v918_v60 }
 0x352   :  { %v916_v30 = vpop.permute.xlu0 %915 }
 0x353   :  { %1981 = vmatpush.xpose.msk.msrb.mxu2 %vm771_vm5, %v916_v30 }
 0x354   :  { %v912_v34 = vpop.permute.xlu1 %911 }
 0x355   :  { %1958 = vmatmul.msk.f32.gmra.mxu1 %vm771_vm5, %v3075_v59  ;;  %2122 = vrot.lane.b32.xlu2 %v2126_v19, %s2538_s9 }
 0x356   :  { %2137 = vrot.lane.b32.xlu1 %v2136_v31, %s2539_s10 }
 0x357   :  { %1982 = vmatpush.xpose.msk.msrb.mxu2 %vm771_vm5, %v914_v53 }
 0x35a   :  { %v910_v38 = vpop.permute.xlu0 %909 }
 0x35b   :  { %1983 = vmatpush.xpose.msk.msrb.mxu2 %vm771_vm5, %v912_v34 }
 0x35d   :  { %1959 = vmatmul.msk.f32.gmra.mxu1 %vm771_vm5, %v3064_v40  ;;  %2132 = vrot.lane.b32.xlu2 %v2136_v31, %s2538_s9 }
 0x35e   :  { %2142 = vrot.lane.b32.xlu1 %v2141_v35, %s2538_s9 }
 0x35f   :  { %1984 = vmatpush.xpose.msk.msrb.mxu2 %vm771_vm5, %v910_v38 }
 0x365   :  { %1960 = vmatmul.msk.f32.gmra.mxu1 %vm771_vm5, %v3053_v36 }
 0x366   :  { %2147 = vrot.lane.b32.xlu1 %v2141_v35, %s2539_s10 }
 0x36d   :  { %1961 = vmatmul.msk.f32.gmra.mxu1 %vm771_vm5, %v3022_v8 }
 0x375   :  { %1962 = vmatmul.msk.f32.gmra.mxu1 %vm771_vm5, %v3014_v18 }
 0x377   :  { %v908_v39 = vpop.permute.xlu2 %907 }
 0x378   :  { %1985 = vmatpush.xpose.msk.msrb.mxu2 %vm771_vm5, %v908_v39 }
 0x37d   :  { %1963 = vmatmul.msk.f32.gmra.mxu1 %vm771_vm5, %v3006_v14 }
 0x385   :  { %1964 = vmatmul.msk.f32.gmra.mxu1 %vm771_vm5, %v2981_v11 }
 0x38d   :  { %1965 = vmatmul.msk.f32.gmra.mxu1 %vm771_vm5, %v2926_v6 }
 0x38f   :  { %v902_v36 = vpop.permute.xlu2 %901 }
 0x395   :  { %1966 = vmatmul.msk.f32.gmra.mxu1 %vm771_vm5, %v2931_v12 }
 0x397   :  { %v2083_v8 = vpop.permute.xlu2 %2082  ;;  %v906_v41 = vpop.permute.xlu1 %905 }
 0x398   :  { %1986 = vmatpush.xpose.msk.msrb.mxu2 %vm771_vm5, %v906_v41  ;;  %v2084_v6 = vunpack.i.l.bf16 %v2083_v8  ;;  %v2085_v12 = vunpack.i.h.bf16 %v2083_v8 }
 0x39d   :  { %1967 = vmatmul.msk.f32.gmra.mxu1 %vm771_vm5, %v2936_v28 }
 0x39f   :  { %v2098_v18 = vpop.permute.xlu2 %2097  ;;  %v2073_v40 = vpop.permute.xlu1 %2072 }
 0x3a0   :  { %v2074_v14 = vunpack.i.l.bf16 %v2073_v40  ;;  %v904_v44 = vpop.permute.xlu0 %903  ;;  %v2075_v11 = vunpack.i.h.bf16 %v2073_v40  ;;  %2157 = vrot.lane.b32.xlu2 %v2098_v18, %s2538_s9 }
 0x3a1   :  { %1987 = vmatpush.xpose.msk.msrb.mxu2 %vm771_vm5, %v904_v44 }
 0x3a2   :  { %1270 = vmatpush.msrb.mxu0 %v2074_v14  ;;  %2025 = vmatpush.msrb.mxu1 %v2074_v14 }
 0x3a3   :  { %2026 = vmatpush.msra.mxu3 %v2074_v14  ;;  %v729_v14 = vld [vmem:[#allocation10 + $0x30] sm:$0xff] }
 0x3a4   :  { %1271 = vmatpush.msrb.mxu0 %v2075_v11  ;;  %2027 = vmatpush.msrb.mxu1 %v2075_v11 }
 0x3a5   :  { %1968 = vmatmul.msk.f32.gmra.mxu1 %vm771_vm5, %v2946_v63  ;;  %1988 = vmatpush.xpose.msk.msrb.mxu2 %vm771_vm5, %v902_v36 }
 0x3a6   :  { %2028 = vmatpush.msra.mxu3 %v2075_v11  ;;  %1272 = vmatpush.msrb.mxu0 %v2084_v6 }
 0x3a7   :  { %v2088_v28 = vpop.permute.xlu1 %2087  ;;  %2029 = vmatpush.msrb.mxu1 %v2084_v6  ;;  %v2113_v59 = vpop.permute.xlu2 %2112 }
 0x3a8   :  { %2030 = vmatpush.msra.mxu3 %v2084_v6  ;;  %v2078_v45 = vpop.permute.xlu0 %2077  ;;  %1989 = vmatmul.msk.f32.vlgmr.msrb.gmra.mxu2 %vm771_vm5, %v3134_v9  ;;  %v2114_v62 = vunpack.i.l.bf16 %v2113_v59  ;;  %v2115_v0 = vunpack.i.h.bf16 %v2113_v59 }
 0x3a9   :  { %1273 = vmatpush.msrb.mxu0 %v2085_v12  ;;  %2031 = vmatpush.msrb.mxu1 %v2085_v12 }
 0x3aa   :  { %2032 = vmatpush.msra.mxu3 %v2085_v12  ;;  %2152 = vrot.lane.b32.xlu0 %v2088_v28, %s2538_s9 }
 0x3ad   :  { %1969 = vmatmul.msk.f32.gmra.mxu1 %vm771_vm5, %v2956_v15 }
 0x3af   :  { %v2103_v63 = vpop.permute.xlu1 %2102  ;;  %v2123_v23 = vpop.permute.xlu2 %2122 }
 0x3b0   :  { %v2093_v21 = vpop.permute.xlu0 %2092  ;;  %1990 = vmatmul.msk.f32.gmra.mxu2 %vm771_vm5, %v3126_v29  ;;  %v2104_v55 = vunpack.i.l.bf16 %v2103_v63  ;;  %v2105_v15 = vunpack.i.h.bf16 %v2103_v63  ;;  %v2125_v46 = vunpack.i.h.bf16 %v2123_v23 }
 0x3b1   :  { %v2094_v51 = vunpack.i.l.bf16 %v2093_v21  ;;  %v2095_v52 = vunpack.i.h.bf16 %v2093_v21 }
 0x3b2   :  { %2167 = vrot.lane.b32.xlu0 %v2078_v45, %s2538_s9 }
 0x3b3   :  { %1274 = vmatpush.msrb.mxu0 %v2094_v51  ;;  %2033 = vmatpush.msrb.mxu1 %v2094_v51 }
 0x3b4   :  { %2034 = vmatpush.msra.mxu3 %v2094_v51  ;;  %v728_v51 = vld [vmem:[#allocation10 + $0x28] sm:$0xff] }
 0x3b5   :  { %1970 = vmatmul.msk.f32.gmra.mxu1 %vm771_vm5, %v2967_v13  ;;  %1275 = vmatpush.msrb.mxu0 %v2095_v52  ;;  %v2124_v13 = vunpack.i.l.bf16 %v2123_v23 }
 0x3b6   :  { %2035 = vmatpush.msrb.mxu1 %v2095_v52  ;;  %2036 = vmatpush.msra.mxu3 %v2095_v52 }
 0x3b7   :  { %1276 = vmatpush.msrb.mxu0 %v2104_v55  ;;  %v3219_v48 = vpop.permute.xlu1 %2117  ;;  %v2133_v29 = vpop.permute.xlu2 %2132 }
 0x3b8   :  { %2037 = vmatpush.msrb.mxu1 %v2104_v55  ;;  %2038 = vmatpush.msra.mxu3 %v2104_v55  ;;  %v2108_v61 = vpop.permute.xlu0 %2107  ;;  %v2134_v4 = vunpack.i.l.bf16 %v2133_v29 }
 0x3b9   :  { %1991 = vmatmul.msk.f32.gmra.mxu2 %vm771_vm5, %v3120_v50  ;;  %1277 = vmatpush.msrb.mxu0 %v2105_v15 }
 0x3ba   :  { %2039 = vmatpush.msrb.mxu1 %v2105_v15  ;;  %2040 = vmatpush.msra.mxu3 %v2105_v15 }
 0x3bb   :  { %1278 = vmatpush.msrb.mxu0 %v2114_v62  ;;  %2162 = vrot.lane.b32.xlu1 %v2108_v61, %s2538_s9 }
 0x3bc   :  { %2041 = vmatpush.msrb.mxu1 %v2114_v62  ;;  %2042 = vmatpush.msra.mxu3 %v2114_v62 }
 0x3bd   :  { %1971 = vmatmul.msk.f32.gmra.mxu1 %vm771_vm5, %v2977_v22  ;;  %1279 = vmatpush.msrb.mxu0 %v2115_v0  ;;  %v2135_v22 = vunpack.i.h.bf16 %v2133_v29 }
 0x3be   :  { %2043 = vmatpush.msrb.mxu1 %v2115_v0  ;;  %2044 = vmatpush.msra.mxu3 %v2115_v0 }
 0x3bf   :  { %1280 = vmatpush.msrb.mxu0 %v2124_v13 }
 0x3c0   :  { %2045 = vmatpush.msrb.mxu1 %v2124_v13  ;;  %v2128_v50 = vpop.permute.xlu1 %2127  ;;  %2046 = vmatpush.msra.mxu3 %v2124_v13 }
 0x3c1   :  { %1992 = vmatmul.msk.f32.gmra.mxu2 %vm771_vm5, %v3116_v26  ;;  %1281 = vmatpush.msrb.mxu0 %v2125_v46 }
 0x3c2   :  { %2047 = vmatpush.msrb.mxu1 %v2125_v46  ;;  %2048 = vmatpush.msra.mxu3 %v2125_v46 }
 0x3c3   :  { %1282 = vmatpush.msrb.mxu0 %v2134_v4 }
 0x3c4   :  { %2049 = vmatpush.msrb.mxu1 %v2134_v4  ;;  %2050 = vmatpush.msra.mxu3 %v2134_v4 }
 0x3c5   :  { %1972 = vmatmul.msk.f32.gmra.mxu1 %vm771_vm5, %v2990_v1  ;;  %1283 = vmatpush.msrb.mxu0 %v2135_v22  ;;  %v723_v1 = vld [vmem:[#allocation10] sm:$0xff] }
 0x3c6   :  { %2051 = vmatpush.msrb.mxu1 %v2135_v22  ;;  %2052 = vmatpush.msra.mxu3 %v2135_v22 }
 0x3c8   :  { %v2138_v5 = vpop.permute.xlu1 %2137 }
 0x3c9   :  { %1993 = vmatmul.msk.f32.gmra.mxu2 %vm771_vm5, %v3108_v20 }
 0x3ca   :  { %v853_v9 = vpop.f32.mrf.mxu1 }
 0x3cb   :  { %v3242_v10 = vadd.f32 %v853_v9, %v723_v1 }
 0x3d0   :  { %v2143_v26 = vpop.permute.xlu1 %2142 }
 0x3d1   :  { %v2144_v16 = vunpack.i.l.bf16 %v2143_v26  ;;  %1994 = vmatmul.msk.f32.gmra.mxu2 %vm771_vm5, %v3098_v54  ;;  %v2145_v7 = vunpack.i.h.bf16 %v2143_v26  ;;  %v726_v54 = vld [vmem:[#allocation10 + $0x18] sm:$0xff] }
 0x3d2   :  { %v856_v3 = vpop.f32.mrf.mxu1  ;;  %v730_v26 = vld [vmem:[#allocation10 + $0x38] sm:$0xff] }
 0x3d3   :  { %v3237_v17 = vadd.f32 %v856_v3, %v3232_v27  ;;  %1284 = vmatpush.msrb.mxu0 %v2144_v16  ;;  %2053 = vmatpush.msrb.mxu1 %v2144_v16 }
 0x3d4   :  { %2054 = vmatpush.msra.mxu3 %v2144_v16 }
 0x3d5   :  { %1064 = vmax.xlane.f32.xlu2 %v3237_v17  ;;  %1285 = vmatpush.msrb.mxu0 %v2145_v7 }
 0x3d6   :  { %2055 = vmatpush.msrb.mxu1 %v2145_v7  ;;  %2056 = vmatpush.msra.mxu3 %v2145_v7 }
 0x3d9   :  { %1995 = vmatmul.msk.f32.gmra.mxu2 %vm771_vm5, %v3084_v47  ;;  %v727_v47 = vld [vmem:[#allocation10 + $0x20] sm:$0xff] }
 0x3da   :  { %v859_v20 = vpop.f32.mrf.mxu1 }
 0x3db   :  { %v3249_v19 = vadd.f32 %v859_v20, %v725_v2 }
 0x3dc   :  { %1062 = vmax.xlane.f32.xlu0 %v3242_v10 }
 0x3e1   :  { %1996 = vmatmul.msk.f32.gmra.mxu2 %vm771_vm5, %v3044_v37  ;;  %v2148_v37 = vpop.permute.xlu1 %2147 }
 0x3e2   :  { %v862_v57 = vpop.f32.mrf.mxu1 }
 0x3e3   :  { %v3247_v56 = vadd.f32 %v862_v57, %v726_v54 }
 0x3e5   :  { %1068 = vmax.xlane.f32.xlu2 %v3247_v56  ;;  %1066 = vmax.xlane.f32.xlu1 %v3249_v19 }
 0x3e9   :  { %1997 = vmatmul.msk.f32.gmra.mxu2 %vm771_vm5, %v3034_v49 }
 0x3ea   :  { %v865_v60 = vpop.f32.mrf.mxu1 }
 0x3eb   :  { %v3255_v30 = vadd.f32 %v865_v60, %v727_v47 }
 0x3ed   :  { %1070 = vmax.xlane.f32.xlu0 %v3255_v30 }
 0x3f1   :  { %1998 = vmatmul.msk.f32.gmra.mxu2 %vm771_vm5, %v3028_v43 }
 0x3f2   :  { %v3284_v41 = vpop.f32.mrf.mxu1 }
 0x3f9   :  { %1999 = vmatmul.msk.f32.gmra.mxu2 %vm771_vm5, %v3036_v24 }
 0x3fa   :  { %v2158_v53 = vpop.permute.xlu2 %2157  ;;  %v871_v44 = vpop.f32.mrf.mxu1 }
 0x3fb   :  { %v2160_v38 = vunpack.i.h.bf16 %v2158_v53  ;;  %v3289_v6 = vadd.f32 %v871_v44, %v729_v14  ;;  %v734_v44 = vld [vmem:[#allocation10 + $0x58] sm:$0xff] }
 0x3fd   :  { %2172 = vrot.lane.b32.xlu2 %v3219_v48, %s2538_s9 }
 0x3fe   :  { %2177 = vrot.lane.b32.xlu1 %v2128_v50, %s2538_s9 }
 0x401   :  { %2000 = vmatmul.msk.f32.gmra.mxu2 %vm771_vm5, %v3042_v25  ;;  %2182 = vrot.lane.b32.xlu0 %v2138_v5, %s2538_s9 }
 0x402   :  { %v3303_v61 = vpop.f32.mrf.mxu1 }
 0x409   :  { %2001 = vmatmul.msk.f32.gmra.mxu2 %vm771_vm5, %v3030_v58  ;;  %2187 = vrot.lane.b32.xlu0 %v2148_v37, %s2538_s9 }
 0x411   :  { %2002 = vmatmul.msk.f32.gmra.mxu2 %vm771_vm5, %v3038_v32  ;;  %v2159_v32 = vunpack.i.l.bf16 %v2158_v53 }
 0x419   :  { %2003 = vmatmul.msk.f32.gmra.mxu2 %vm771_vm5, %v3046_v33 }
 0x41c   :  { %v2153_v43 = vpop.permute.xlu0 %2152 }
 0x41d   :  { %v2154_v31 = vunpack.i.l.bf16 %v2153_v43  ;;  %v2155_v34 = vunpack.i.h.bf16 %v2153_v43 }
 0x421   :  { %2004 = vmatmul.msk.f32.gmra.mxu2 %vm771_vm5, %v3050_v42 }
 0x424   :  { %v2168_v49 = vpop.permute.xlu0 %2167 }
 0x425   :  { %v2169_v24 = vunpack.i.l.bf16 %v2168_v49  ;;  %v2170_v25 = vunpack.i.h.bf16 %v2168_v49  ;;  %v732_v49 = vld [vmem:[#allocation10 + $0x48] sm:$0xff] }
 0x427   :  { %1383 = vmatpush.msra.mxu0 %v2169_v24 }
 0x429   :  { %1384 = vmatpush.msra.mxu0 %v2170_v25 }
 0x42b   :  { %v1014_v58 = vpop.f32.mrf.mxu2  ;;  %1385 = vmatpush.msra.mxu0 %v2154_v31  ;;  %v3318_v31 = vadd.f32 %v3284_v41, %v728_v51 }
 0x42c   :  { %v3277_v35 = vadd.f32 %v1014_v58, %v723_v1 }
 0x42d   :  { %1386 = vmatpush.msra.mxu0 %v2155_v34  ;;  %v2163_v33 = vpop.permute.xlu1 %2162 }
 0x42e   :  { %1094 = vmax.xlane.f32.xlu2 %v3277_v35  ;;  %v2164_v42 = vunpack.i.l.bf16 %v2163_v33  ;;  %v2165_v36 = vunpack.i.h.bf16 %v2163_v33 }
 0x42f   :  { %1387 = vmatpush.msra.mxu0 %v2159_v32 }
 0x431   :  { %1388 = vmatpush.msra.mxu0 %v2160_v38  ;;  %v733_v38 = vld [vmem:[#allocation10 + $0x50] sm:$0xff] }
 0x433   :  { %v1017_v39 = vpop.f32.mrf.mxu2  ;;  %1389 = vmatpush.msra.mxu0 %v2164_v42 }
 0x434   :  { %v3281_v8 = vadd.f32 %v1017_v39, %v3232_v27  ;;  %v877_v27 = vpop.f32.mrf.mxu1 }
 0x435   :  { %1390 = vmatpush.msra.mxu0 %v2165_v36 }
 0x436   :  { %1096 = vmax.xlane.f32.xlu1 %v3281_v8 }
 0x43c   :  { %v1020_v18 = vpop.f32.mrf.mxu2 }
 0x43d   :  { %v3286_v40 = vadd.f32 %v1020_v18, %v725_v2 }
 0x43f   :  { %1098 = vmax.xlane.f32.xlu0 %v3286_v40 }
 0x444   :  { %v1023_v11 = vpop.f32.mrf.mxu2 }
 0x445   :  { %v3291_v12 = vadd.f32 %v1023_v11, %v726_v54 }
 0x447   :  { %1100 = vmax.xlane.f32.xlu2 %v3291_v12  ;;  %1074 = vmax.xlane.f32.xlu0 %v3289_v6 }
 0x448   :  { %v1065_v59 = vpop.xlane.xlu2 %1064 }
 0x449   :  { %v1127_v15 = vsub.f32 %v3237_v17, %v1065_v59 }
 0x44b   :  { %v1160_v62 = vmul.f32 1.442695, %v1127_v15  ;;  %v736_v15 = vld [vmem:[#allocation10 + $0x68] sm:$0xff] }
 0x44c   :  { %v1026_v28 = vpop.f32.mrf.mxu2 }
 0x44d   :  { %v3295_v45 = vadd.f32 %v1026_v28, %v727_v47  ;;  %v3328_v28 = vadd.f32 %v3303_v61, %v730_v26 }
 0x44f   :  { %1102 = vmax.xlane.f32.xlu2 %v3295_v45  ;;  %v1063_v63 = vpop.xlane.xlu0 %1062 }
 0x450   :  { %v1126_v21 = vsub.f32 %v3242_v10, %v1063_v63  ;;  %v731_v10 = vld [vmem:[#allocation10 + $0x40] sm:$0xff] }
 0x451   :  { %v735_v63 = vld [vmem:[#allocation10 + $0x60] sm:$0xff] }
 0x452   :  { %v1158_v52 = vmul.f32 1.442695, %v1126_v21 }
 0x454   :  { %v1029_v23 = vpop.f32.mrf.mxu2  ;;  %2232 = vpow2.f32 %v1158_v52  ;;  %v3334_v52 = vadd.f32 %v877_v27, %v731_v10 }
 0x455   :  { %v3299_v55 = vadd.f32 %v1029_v23, %v728_v51  ;;  %2234 = vpow2.f32 %v1160_v62 }
 0x457   :  { %1104 = vmax.xlane.f32.xlu1 %v3299_v55 }
 0x458   :  { %v1069_v48 = vpop.xlane.xlu2 %1068  ;;  %v1067_v13 = vpop.xlane.xlu1 %1066 }
 0x459   :  { %v1128_v50 = vsub.f32 %v3249_v19, %v1067_v13  ;;  %v1129_v17 = vsub.f32 %v3247_v56, %v1069_v48  ;;  %v880_v19 = vpop.f32.mrf.mxu1  ;;  %v737_v13 = vld [vmem:[#allocation10 + $0x70] sm:$0xff] }
 0x45a   :  { %v2233_v0 = vpop.eup %2232  ;;  %v3340_v61 = vadd.f32 %v880_v19, %v732_v49 }
 0x45b   :  { %1286 = vmatmul.f32.vlgmr.msrb.gmra.mxu0 %v2233_v0  ;;  %v1162_v5 = vmul.f32 1.442695, %v1128_v50  ;;  %v2235_v3 = vpop.eup %2234  ;;  %v1164_v1 = vmul.f32 1.442695, %v1129_v17 }
 0x45c   :  { %v1032_v29 = vpop.f32.mrf.mxu2 }
 0x45d   :  { %v3305_v46 = vadd.f32 %v1032_v29, %v729_v14  ;;  %2236 = vpow2.f32 %v1162_v5 }
 0x45e   :  { %2238 = vpow2.f32 %v1164_v1 }
 0x45f   :  { %1106 = vmax.xlane.f32.xlu2 %v3305_v46 }
 0x460   :  { %v2173_v4 = vpop.permute.xlu2 %2172  ;;  %v1071_v20 = vpop.xlane.xlu0 %1070 }
 0x461   :  { %v2174_v22 = vunpack.i.l.bf16 %v2173_v4  ;;  %v2175_v9 = vunpack.i.h.bf16 %v2173_v4  ;;  %v1130_v47 = vsub.f32 %v3255_v30, %v1071_v20  ;;  %v883_v30 = vpop.f32.mrf.mxu1 }
 0x462   :  { %v3346_v50 = vadd.f32 %v883_v30, %v733_v38 }
 0x463   :  { %1391 = vmatpush.msra.mxu0 %v2174_v22  ;;  %v2237_v2 = vpop.eup %2236  ;;  %v1166_v37 = vmul.f32 1.442695, %v1130_v47 }
 0x464   :  { %v1035_v16 = vpop.f32.mrf.mxu2  ;;  %1289 = vmatmul.f32.gmra.mxu0 %v2235_v3  ;;  %v2239_v25 = vpop.eup %2238 }
 0x465   :  { %v3309_v7 = vadd.f32 %v1035_v16, %v730_v26  ;;  %1392 = vmatpush.msra.mxu0 %v2175_v9  ;;  %2240 = vpow2.f32 %v1166_v37  ;;  %v738_v26 = vld [vmem:[#allocation10 + $0x78] sm:$0xff] }
 0x467   :  { %1108 = vmax.xlane.f32.xlu1 %v3309_v7 }
 0x469   :  { %v886_v14 = vpop.f32.mrf.mxu1 }
 0x46a   :  { %v3353_v16 = vadd.f32 %v886_v14, %v734_v44 }
 0x46b   :  { %v2241_v36 = vpop.eup %2240 }
 0x46c   :  { %v1038_v54 = vpop.f32.mrf.mxu2  ;;  %1292 = vmatmul.f32.gmra.mxu0 %v2237_v2 }
 0x46d   :  { %v3313_v57 = vadd.f32 %v1038_v54, %v731_v10 }
 0x46f   :  { %1110 = vmax.xlane.f32.xlu2 %v3313_v57 }
 0x470   :  { %v2178_v60 = vpop.permute.xlu1 %2177 }
 0x471   :  { %v2179_v56 = vunpack.i.l.bf16 %v2178_v60  ;;  %v2180_v58 = vunpack.i.h.bf16 %v2178_v60  ;;  %v889_v21 = vpop.f32.mrf.mxu1 }
 0x472   :  { %v3355_v3 = vadd.f32 %v889_v21, %v735_v63 }
 0x473   :  { %v2183_v43 = vpop.permute.xlu0 %2182  ;;  %1393 = vmatpush.msra.mxu0 %v2179_v56 }
 0x474   :  { %v1041_v24 = vpop.f32.mrf.mxu2  ;;  %1295 = vmatmul.f32.gmra.mxu0 %v2239_v25  ;;  %v2184_v34 = vunpack.i.l.bf16 %v2183_v43  ;;  %v2185_v32 = vunpack.i.h.bf16 %v2183_v43 }
 0x475   :  { %v3320_v53 = vadd.f32 %v1041_v24, %v732_v49  ;;  %1394 = vmatpush.msra.mxu0 %v2180_v58 }
 0x477   :  { %1072 = vmax.xlane.f32.xlu2 %v3318_v31  ;;  %1112 = vmax.xlane.f32.xlu1 %v3320_v53 }
 0x478   :  { %1395 = vmatpush.msra.mxu0 %v2184_v34 }
 0x479   :  { %v892_v0 = vpop.f32.mrf.mxu1 }
 0x47a   :  { %1396 = vmatpush.msra.mxu0 %v2185_v32  ;;  %v3367_v60 = vadd.f32 %v892_v0, %v736_v15 }
 0x47b   :  { %v2188_v33 = vpop.permute.xlu0 %2187 }
 0x47c   :  { %v1044_v42 = vpop.f32.mrf.mxu2  ;;  %v2189_v39 = vunpack.i.l.bf16 %v2188_v33  ;;  %1298 = vmatmul.f32.gmra.mxu0 %v2241_v36  ;;  %v2190_v18 = vunpack.i.h.bf16 %v2188_v33 }
 0x47d   :  { %v3324_v41 = vadd.f32 %v1044_v42, %v733_v38 }
 0x47e   :  { %1397 = vmatpush.msra.mxu0 %v2189_v39 }
 0x47f   :  { %1114 = vmax.xlane.f32.xlu1 %v3324_v41 }
 0x480   :  { %1398 = vmatpush.msra.mxu0 %v2190_v18 }
 0x481   :  { %v895_v22 = vpop.f32.mrf.mxu1 }
 0x482   :  { %v3363_v2 = vadd.f32 %v895_v22, %v737_v13 }
 0x484   :  { %v1047_v11 = vpop.f32.mrf.mxu2 }
 0x485   :  { %v3330_v59 = vadd.f32 %v1047_v11, %v734_v44 }
 0x487   :  { %1116 = vmax.xlane.f32.xlu2 %v3330_v59  ;;  %1076 = vmax.xlane.f32.xlu1 %v3328_v28 }
 0x489   :  { %v898_v20 = vpop.f32.mrf.mxu1 }
 0x48a   :  { %v3365_v19 = vadd.f32 %v898_v20, %v738_v26 }
 0x48c   :  { %v1050_v51 = vpop.f32.mrf.mxu2 }
 0x48d   :  { %v3336_v23 = vadd.f32 %v1050_v51, %v735_v63 }
 0x48f   :  { %1078 = vmax.xlane.f32.xlu2 %v3334_v52  ;;  %1118 = vmax.xlane.f32.xlu0 %v3336_v23 }
 0x494   :  { %v1053_v48 = vpop.f32.mrf.mxu2 }
 0x495   :  { %v3342_v62 = vadd.f32 %v1053_v48, %v736_v15 }
 0x497   :  { %1120 = vmax.xlane.f32.xlu1 %v3342_v62  ;;  %1080 = vmax.xlane.f32.xlu0 %v3340_v61 }
 0x49c   :  { %v1056_v29 = vpop.f32.mrf.mxu2 }
 0x49d   :  { %v3348_v4 = vadd.f32 %v1056_v29, %v737_v13 }
 0x49f   :  { %1122 = vmax.xlane.f32.xlu2 %v3348_v4  ;;  %1082 = vmax.xlane.f32.xlu1 %v3346_v50 }
 0x4a1   :  { %v1095_v5 = vpop.xlane.xlu2 %1094 }
 0x4a2   :  { %v1142_v9 = vsub.f32 %v3277_v35, %v1095_v5 }
 0x4a4   :  { %v1059_v27 = vpop.f32.mrf.mxu2  ;;  %v1190_v17 = vmul.f32 1.442695, %v1142_v9 }
 0x4a5   :  { %v3357_v1 = vadd.f32 %v1059_v27, %v738_v26 }
 0x4a6   :  { %2242 = vpow2.f32 %v1190_v17 }
 0x4a7   :  { %1084 = vmax.xlane.f32.xlu2 %v3353_v16  ;;  %1086 = vmax.xlane.f32.xlu1 %v3355_v3 }
 0x4a8   :  { %1124 = vmax.xlane.f32.xlu0 %v3357_v1 }
 0x4a9   :  { %v1097_v10 = vpop.xlane.xlu1 %1096 }
 0x4aa   :  { %v1143_v35 = vsub.f32 %v3281_v8, %v1097_v10 }
 0x4ac   :  { %v2243_v54 = vpop.eup %2242  ;;  %v1192_v47 = vmul.f32 1.442695, %v1143_v35 }
 0x4ad   :  { %1399 = vmatmul.f32.vlgmr.msra.gmra.mxu0 %v2243_v54 }
 0x4ae   :  { %2244 = vpow2.f32 %v1192_v47 }
 0x4af   :  { %1090 = vmax.xlane.f32.xlu2 %v3363_v2  ;;  %1092 = vmax.xlane.f32.xlu1 %v3365_v19 }
 0x4b0   :  { %1088 = vmax.xlane.f32.xlu0 %v3367_v60 }
 0x4b2   :  { %v1099_v37 = vpop.xlane.xlu0 %1098 }
 0x4b3   :  { %v1144_v56 = vsub.f32 %v3286_v40, %v1099_v37 }
 0x4b4   :  { %v2245_v8 = vpop.eup %2244 }
 0x4b5   :  { %v1194_v43 = vmul.f32 1.442695, %v1144_v56  ;;  %1402 = vmatmul.f32.gmra.mxu0 %v2245_v8 }
 0x4b7   :  { %2246 = vpow2.f32 %v1194_v43 }
 0x4ba   :  { %v1101_v49 = vpop.xlane.xlu2 %1100  ;;  %v1075_v0 = vpop.xlane.xlu0 %1074 }
 0x4bb   :  { %v1145_v24 = vsub.f32 %v3291_v12, %v1101_v49  ;;  %v1132_v9 = vsub.f32 %v3289_v6, %v1075_v0 }
 0x4bd   :  { %v2247_v25 = vpop.eup %2246  ;;  %v1196_v58 = vmul.f32 1.442695, %v1145_v24 }
 0x4be   :  { %1405 = vmatmul.f32.gmra.mxu0 %v2247_v25 }
 0x4bf   :  { %2248 = vpow2.f32 %v1196_v58 }
 0x4c2   :  { %v1103_v30 = vpop.xlane.xlu2 %1102 }
 0x4c3   :  { %v1146_v34 = vsub.f32 %v3295_v45, %v1103_v30 }
 0x4c5   :  { %v2249_v32 = vpop.eup %2248  ;;  %v1198_v33 = vmul.f32 1.442695, %v1146_v34 }
 0x4c6   :  { %1408 = vmatmul.f32.gmra.mxu0 %v2249_v32 }
 0x4c7   :  { %2250 = vpow2.f32 %v1198_v33 }
 0x4ca   :  { %v1105_v38 = vpop.xlane.xlu1 %1104 }
 0x4cb   :  { %v1147_v40 = vsub.f32 %v3299_v55, %v1105_v38 }
 0x4cd   :  { %v2251_v42 = vpop.eup %2250  ;;  %v1200_v39 = vmul.f32 1.442695, %v1147_v40 }
 0x4ce   :  { %1411 = vmatmul.f32.gmra.mxu0 %v2251_v42 }
 0x4cf   :  { %2252 = vpow2.f32 %v1200_v39 }
 0x4d2   :  { %v1107_v36 = vpop.xlane.xlu2 %1106 }
 0x4d3   :  { %v1148_v12 = vsub.f32 %v3305_v46, %v1107_v36  ;;  %v2540_v36 = vmov 8  }
 0x4d4   :  { %2191 = vset.pattern.permute.xlu0 %v2540_v36  ;;  %2192 = vset.pattern.permute.xlu2 %v2540_v36 }
 0x4d5   :  { %v2253_v18 = vpop.eup %2252  ;;  %v1202_v14 = vmul.f32 1.442695, %v1148_v12  ;;  %2193 = vset.pattern.permute.xlu1 %v2540_v36 }
 0x4d6   :  { %1414 = vmatmul.f32.gmra.mxu0 %v2253_v18 }
 0x4d7   :  { %2254 = vpow2.f32 %v1202_v14 }
 0x4d8   :  { %v3383_v35 = vpop.f32.mrf.mxu0 }
 0x4da   :  { %v1109_v44 = vpop.xlane.xlu1 %1108 }
 0x4db   :  { %v1149_v45 = vsub.f32 %v3309_v7, %v1109_v44 }
 0x4dd   :  { %v2255_v11 = vpop.eup %2254  ;;  %v1204_v63 = vmul.f32 1.442695, %v1149_v45 }
 0x4de   :  { %1417 = vmatmul.f32.gmra.mxu0 %v2255_v11 }
 0x4df   :  { %2256 = vpow2.f32 %v1204_v63 }
 0x4e1   :  { %v3389_v58 = vpop.f32.mrf.mxu0 }
 0x4e2   :  { %v1111_v21 = vpop.xlane.xlu2 %1110 }
 0x4e3   :  { %v1150_v55 = vsub.f32 %v3313_v57, %v1111_v21  ;;  %v1170_v57 = vmul.f32 1.442695, %v1132_v9 }
 0x4e5   :  { %v2257_v51 = vpop.eup %2256  ;;  %v1206_v15 = vmul.f32 1.442695, %v1150_v55 }
 0x4e6   :  { %1420 = vmatmul.f32.gmra.mxu0 %v2257_v51 }
 0x4e7   :  { %2258 = vpow2.f32 %v1206_v15 }
 0x4e9   :  { %v3393_v39 = vpop.f32.mrf.mxu0 }
 0x4ea   :  { %v1073_v48 = vpop.xlane.xlu2 %1072  ;;  %v1113_v46 = vpop.xlane.xlu1 %1112 }
 0x4eb   :  { %v1131_v13 = vsub.f32 %v3318_v31, %v1073_v48  ;;  %v1151_v29 = vsub.f32 %v3320_v53, %v1113_v46 }
 0x4ed   :  { %v2259_v22 = vpop.eup %2258  ;;  %v1168_v7 = vmul.f32 1.442695, %v1131_v13  ;;  %v1208_v5 = vmul.f32 1.442695, %v1151_v29 }
 0x4ee   :  { %1423 = vmatmul.f32.gmra.mxu0 %v2259_v22 }
 0x4ef   :  { %2260 = vpow2.f32 %v1168_v7 }
 0x4f0   :  { %2262 = vpow2.f32 %v1208_v5 }
 0x4f1   :  { %2264 = vpow2.f32 %v1170_v57  ;;  %v3397_v63 = vpop.f32.mrf.mxu0 }
 0x4f2   :  { %v1115_v26 = vpop.xlane.xlu1 %1114 }
 0x4f3   :  { %v1152_v27 = vsub.f32 %v3324_v41, %v1115_v26 }
 0x4f5   :  { %v2261_v17 = vpop.eup %2260  ;;  %v1210_v20 = vmul.f32 1.442695, %v1152_v27 }
 0x4f6   :  { %v2263_v10 = vpop.eup %2262  ;;  %1301 = vmatmul.f32.vlgmr.msrb.gmra.mxu1 %v2261_v17 }
 0x4f7   :  { %2266 = vpow2.f32 %v1210_v20  ;;  %1426 = vmatmul.f32.gmra.mxu0 %v2263_v10  ;;  %v2265_v47 = vpop.eup %2264 }
 0x4f9   :  { %v3402_v29 = vpop.f32.mrf.mxu0 }
 0x4fa   :  { %v1117_v31 = vpop.xlane.xlu2 %1116  ;;  %v1077_v53 = vpop.xlane.xlu1 %1076 }
 0x4fb   :  { %v1153_v6 = vsub.f32 %v3330_v59, %v1117_v31  ;;  %v1133_v54 = vsub.f32 %v3328_v28, %v1077_v53 }
 0x4fd   :  { %v2267_v37 = vpop.eup %2266  ;;  %v1212_v56 = vmul.f32 1.442695, %v1153_v6  ;;  %v1172_v8 = vmul.f32 1.442695, %v1133_v54 }
 0x4fe   :  { %1304 = vmatmul.f32.gmra.mxu1 %v2265_v47 }
 0x4ff   :  { %2268 = vpow2.f32 %v1212_v56  ;;  %1429 = vmatmul.f32.gmra.mxu0 %v2267_v37 }
 0x500   :  { %2270 = vpow2.f32 %v1172_v8 }
 0x502   :  { %v1079_v41 = vpop.xlane.xlu2 %1078  ;;  %v1119_v43 = vpop.xlane.xlu0 %1118 }
 0x503   :  { %v1134_v49 = vsub.f32 %v3334_v52, %v1079_v41  ;;  %v1154_v24 = vsub.f32 %v3336_v23, %v1119_v43 }
 0x505   :  { %v2269_v25 = vpop.eup %2268  ;;  %v1174_v59 = vmul.f32 1.442695, %v1134_v49  ;;  %v1214_v30 = vmul.f32 1.442695, %v1154_v24 }
 0x506   :  { %v2271_v28 = vpop.eup %2270 }
 0x507   :  { %2272 = vpow2.f32 %v1174_v59  ;;  %1307 = vmatmul.f32.gmra.mxu1 %v2271_v28  ;;  %1432 = vmatmul.f32.gmra.mxu0 %v2269_v25 }
 0x508   :  { %2274 = vpow2.f32 %v1214_v30 }
 0x50a   :  { %v1121_v34 = vpop.xlane.xlu1 %1120  ;;  %v1081_v32 = vpop.xlane.xlu0 %1080 }
 0x50b   :  { %v1155_v33 = vsub.f32 %v3342_v62, %v1121_v34  ;;  %v1135_v38 = vsub.f32 %v3340_v61, %v1081_v32 }
 0x50d   :  { %v2273_v40 = vpop.eup %2272  ;;  %v1216_v52 = vmul.f32 1.442695, %v1155_v33  ;;  %v1176_v42 = vmul.f32 1.442695, %v1135_v38 }
 0x50e   :  { %v2275_v23 = vpop.eup %2274  ;;  %1310 = vmatmul.f32.vlgmr.msra.gmra.mxu3 %v2273_v40 }
 0x50f   :  { %2276 = vpow2.f32 %v1216_v52  ;;  %1435 = vmatmul.f32.gmra.mxu0 %v2275_v23 }
 0x510   :  { %2278 = vpow2.f32 %v1176_v42 }
 0x512   :  { %v1123_v12 = vpop.xlane.xlu2 %1122  ;;  %v1083_v18 = vpop.xlane.xlu1 %1082 }
 0x513   :  { %v1156_v62 = vsub.f32 %v3348_v4, %v1123_v12  ;;  %v1136_v61 = vsub.f32 %v3346_v50, %v1083_v18 }
 0x515   :  { %v2277_v14 = vpop.eup %2276  ;;  %v1218_v44 = vmul.f32 1.442695, %v1156_v62  ;;  %v1178_v45 = vmul.f32 1.442695, %v1136_v61 }
 0x516   :  { %v2279_v11 = vpop.eup %2278 }
 0x517   :  { %2280 = vpow2.f32 %v1218_v44  ;;  %1313 = vmatmul.f32.gmra.mxu3 %v2279_v11  ;;  %1438 = vmatmul.f32.gmra.mxu0 %v2277_v14 }
 0x518   :  { %2282 = vpow2.f32 %v1178_v45 }
 0x51a   :  { %v1085_v21 = vpop.xlane.xlu2 %1084  ;;  %v1087_v46 = vpop.xlane.xlu1 %1086 }
 0x51b   :  { %v1137_v55 = vsub.f32 %v3353_v16, %v1085_v21  ;;  %v1125_v51 = vpop.xlane.xlu0 %1124  ;;  %v1138_v13 = vsub.f32 %v3355_v3, %v1087_v46 }
 0x51c   :  { %v1157_v15 = vsub.f32 %v3357_v1, %v1125_v51 }
 0x51d   :  { %v2281_v48 = vpop.eup %2280  ;;  %v1180_v4 = vmul.f32 1.442695, %v1137_v55  ;;  %v1182_v22 = vmul.f32 1.442695, %v1138_v13 }
 0x51e   :  { %v2283_v50 = vpop.eup %2282  ;;  %v1220_v0 = vmul.f32 1.442695, %v1157_v15 }
 0x51f   :  { %2284 = vpow2.f32 %v1180_v4  ;;  %1316 = vmatmul.f32.gmra.mxu3 %v2283_v50  ;;  %1441 = vmatmul.f32.gmra.mxu0 %v2281_v48 }
 0x520   :  { %2286 = vpow2.f32 %v1220_v0 }
 0x521   :  { %2288 = vpow2.f32 %v1182_v22 }
 0x522   :  { %v1091_v26 = vpop.xlane.xlu2 %1090 }
 0x523   :  { %v1089_v5 = vpop.xlane.xlu0 %1088  ;;  %v1140_v3 = vsub.f32 %v3363_v2, %v1091_v26 }
 0x524   :  { %v1139_v1 = vsub.f32 %v3367_v60, %v1089_v5  ;;  %v1093_v60 = vpop.xlane.xlu1 %1092 }
 0x525   :  { %v2285_v7 = vpop.eup %2284  ;;  %v1186_v10 = vmul.f32 1.442695, %v1140_v3  ;;  %v1141_v53 = vsub.f32 %v3365_v19, %v1093_v60 }
 0x526   :  { %v2287_v16 = vpop.eup %2286  ;;  %v1184_v57 = vmul.f32 1.442695, %v1139_v1 }
 0x527   :  { %1319 = vmatmul.f32.gmra.mxu3 %v2285_v7  ;;  %1444 = vmatmul.f32.gmra.mxu0 %v2287_v16  ;;  %v2289_v27 = vpop.eup %2288  ;;  %v1188_v47 = vmul.f32 1.442695, %v1141_v53 }
 0x52a   :  { %v3405_v9 = vpop.f32.mrf.mxu0 }
 0x52b   :  { %2290 = vrcp.f32 %v3405_v9 }
 0x52c   :  { %2292 = vpow2.f32 %v1184_v57 }
 0x52f   :  { %1322 = vmatmul.f32.gmra.mxu3 %v2289_v27 }
 0x531   :  { %v2291_v17 = vpop.eup %2290 }
 0x532   :  { %1562 = vperm.xlu0 %2191, %v2291_v17   ;;  %v3409_v20 = vpop.f32.mrf.mxu0  ;;  %v2293_v31 = vpop.eup %2292 }
 0x533   :  { %2294 = vrcp.f32 %v3409_v20 }
 0x534   :  { %2296 = vpow2.f32 %v1186_v10 }
 0x537   :  { %1325 = vmatmul.f32.gmra.mxu3 %v2293_v31 }
 0x539   :  { %v2295_v6 = vpop.eup %2294 }
 0x53a   :  { %1567 = vperm.xlu2 %2192, %v2295_v6   ;;  %v2297_v2 = vpop.eup %2296 }
 0x53b   :  { %v3413_v54 = vpop.f32.mrf.mxu0 }
 0x53c   :  { %2298 = vrcp.f32 %v3413_v54 }
 0x53d   :  { %2300 = vpow2.f32 %v1188_v47  ;;  %v1753_v47 = vld [vmem:[#allocation8 + $0x8] sm:$0xff] }
 0x53e   :  { %1821 = vmatpush.msrb.mxu3 %v1753_v47 }
 0x53f   :  { %1328 = vmatmul.f32.gmra.mxu3 %v2297_v2 }
 0x542   :  { %v2299_v37 = vpop.eup %2298 }
 0x543   :  { %1572 = vperm.xlu1 %2193, %v2299_v37   ;;  %v3416_v56 = vpop.f32.mrf.mxu0  ;;  %v2301_v8 = vpop.eup %2300 }
 0x544   :  { %2302 = vrcp.f32 %v3416_v56 }
 0x545   :  { %2304 = vrcp.f32 %v3383_v35 }
 0x547   :  { %1331 = vmatmul.f32.gmra.mxu3 %v2301_v8 }
 0x54a   :  { %v2303_v41 = vpop.eup %2302 }
 0x54b   :  { %1577 = vperm.xlu2 %2192, %v2303_v41   ;;  %v3420_v19 = vpop.f32.mrf.mxu0  ;;  %v2305_v43 = vpop.eup %2304 }
 0x54c   :  { %2306 = vrcp.f32 %v3420_v19 }
 0x54d   :  { %2308 = vrcp.f32 %v3389_v58 }
 0x552   :  { %v2307_v49 = vpop.eup %2306 }
 0x553   :  { %1482 = vperm.xlu2 %2192, %v2305_v43   ;;  %1582 = vperm.xlu1 %2193, %v2307_v49   ;;  %v3424_v24 = vpop.f32.mrf.mxu0  ;;  %v2309_v25 = vpop.eup %2308  ;;  %v1752_v49 = vld [vmem:[#allocation8] sm:$0xff] }
 0x554   :  { %2310 = vrcp.f32 %v3424_v24  ;;  %1822 = vmatpush.msrb.mxu3 %v1752_v49 }
 0x555   :  { %2312 = vrcp.f32 %v3393_v39 }
 0x55a   :  { %v2311_v59 = vpop.eup %2310 }
 0x55b   :  { %1487 = vperm.xlu2 %2192, %v2309_v25   ;;  %1587 = vperm.xlu1 %2193, %v2311_v59   ;;  %v3428_v30 = vpop.f32.mrf.mxu0  ;;  %v2313_v28 = vpop.eup %2312 }
 0x55c   :  { %2314 = vrcp.f32 %v3428_v30 }
 0x55d   :  { %2316 = vrcp.f32 %v3397_v63 }
 0x562   :  { %v2315_v34 = vpop.eup %2314 }
 0x563   :  { %1492 = vperm.xlu2 %2192, %v2313_v28   ;;  %1592 = vperm.xlu1 %2193, %v2315_v34   ;;  %v3432_v32 = vpop.f32.mrf.mxu0  ;;  %v2317_v33 = vpop.eup %2316 }
 0x564   :  { %2318 = vrcp.f32 %v3432_v32 }
 0x565   :  { %2320 = vrcp.f32 %v3402_v29 }
 0x56a   :  { %v2319_v38 = vpop.eup %2318 }
 0x56b   :  { %1497 = vperm.xlu2 %2192, %v2317_v33   ;;  %1597 = vperm.xlu1 %2193, %v2319_v38   ;;  %v3436_v40 = vpop.f32.mrf.mxu0  ;;  %v2321_v52 = vpop.eup %2320 }
 0x56c   :  { %2322 = vrcp.f32 %v3436_v40 }
 0x572   :  { %v2323_v42 = vpop.eup %2322 }
 0x573   :  { %v3439_v23 = vpop.f32.mrf.mxu1  ;;  %1502 = vperm.xlu2 %2192, %v2321_v52   ;;  %1602 = vperm.xlu1 %2193, %v2323_v42  }
 0x574   :  { %2324 = vrcp.f32 %v3439_v23  ;;  %v3442_v36 = vpop.f32.mrf.mxu0 }
 0x575   :  { %2326 = vrcp.f32 %v3442_v36 }
 0x57a   :  { %v2325_v12 = vpop.eup %2324 }
 0x57b   :  { %v2327_v18 = vpop.eup %2326  ;;  %v3445_v62 = vpop.f32.mrf.mxu1  ;;  %1507 = vperm.xlu2 %2192, %v2325_v12  }
 0x57c   :  { %2328 = vrcp.f32 %v3445_v62  ;;  %1607 = vperm.xlu1 %2193, %v2327_v18   ;;  %v3448_v61 = vpop.f32.mrf.mxu0 }
 0x57d   :  { %2330 = vrcp.f32 %v3448_v61 }
 0x582   :  { %v2329_v14 = vpop.eup %2328 }
 0x583   :  { %v2331_v44 = vpop.eup %2330  ;;  %1512 = vperm.xlu2 %2192, %v2329_v14  }
 0x584   :  { %v3451_v45 = vpop.f32.mrf.mxu1  ;;  %1612 = vperm.xlu1 %2193, %v2331_v44   ;;  %v3453_v11 = vpop.f32.mrf.mxu0 }
 0x585   :  { %2332 = vrcp.f32 %v3451_v45 }
 0x586   :  { %2334 = vrcp.f32 %v3453_v11 }
 0x58b   :  { %v2333_v21 = vpop.eup %2332 }
 0x58c   :  { %v2335_v55 = vpop.eup %2334  ;;  %1517 = vperm.xlu2 %2192, %v2333_v21   ;;  %v3457_v51 = vpop.f32.mrf.mxu0 }
 0x58d   :  { %1617 = vperm.xlu1 %2193, %v2335_v55   ;;  %2336 = vrcp.f32 %v3457_v51 }
 0x591   :  { %v3460_v15 = vpop.f32.mrf.mxu3 }
 0x592   :  { %2338 = vrcp.f32 %v3460_v15 }
 0x593   :  { %v2337_v48 = vpop.eup %2336 }
 0x594   :  { %v3463_v4 = vpop.f32.mrf.mxu0  ;;  %v1568_v3 = vpop.permute.xlu2 %1567 }
 0x595   :  { %1622 = vperm.xlu1 %2193, %v2337_v48   ;;  %2340 = vrcp.f32 %v3463_v4  ;;  %v1657_v10 = vmul.f32 %v1568_v3, %v3409_v20 }
 0x598   :  { %v2339_v46 = vpop.eup %2338 }
 0x599   :  { %1522 = vperm.xlu2 %2192, %v2339_v46  }
 0x59a   :  { %v3466_v50 = vpop.f32.mrf.mxu3 }
 0x59b   :  { %v2341_v0 = vpop.eup %2340  ;;  %2342 = vrcp.f32 %v3466_v50 }
 0x59c   :  { %v3469_v13 = vpop.f32.mrf.mxu0 }
 0x59d   :  { %1627 = vperm.xlu1 %2193, %v2341_v0   ;;  %2344 = vrcp.f32 %v3469_v13 }
 0x5a1   :  { %v2343_v22 = vpop.eup %2342 }
 0x5a2   :  { %v3472_v7 = vpop.f32.mrf.mxu3  ;;  %1527 = vperm.xlu2 %2192, %v2343_v22  }
 0x5a3   :  { %v2345_v5 = vpop.eup %2344  ;;  %2346 = vrcp.f32 %v3472_v7 }
 0x5a4   :  { %v3475_v16 = vpop.f32.mrf.mxu0  ;;  %v1563_v1 = vpop.permute.xlu0 %1562 }
 0x5a5   :  { %1632 = vperm.xlu1 %2193, %v2345_v5   ;;  %2348 = vrcp.f32 %v3475_v16  ;;  %v1656_v57 = vmul.f32 %v1563_v1, %v3405_v9  ;;  %v1578_v53 = vpop.permute.xlu2 %1577 }
 0x5a6   :  { %v1659_v6 = vmul.f32 %v1578_v53, %v3416_v56 }
 0x5a7   :  { %1688 = vrot.lane.b32.xlu0 %v1656_v57, %s2531_s18 }
 0x5a9   :  { %v2347_v26 = vpop.eup %2346 }
 0x5aa   :  { %v3480_v27 = vpop.f32.mrf.mxu3  ;;  %1532 = vperm.xlu2 %2192, %v2347_v26  }
 0x5ab   :  { %2350 = vrcp.f32 %v3480_v27  ;;  %v2349_v17 = vpop.eup %2348 }
 0x5ad   :  { %1637 = vperm.xlu1 %2193, %v2349_v17   ;;  %v1483_v52 = vpop.permute.xlu2 %1482 }
 0x5ae   :  { %v1640_v0 = vmul.f32 %v1483_v52, %v3383_v35 }
 0x5af   :  { %1690 = vrot.lane.b32.xlu0 %v1657_v10, %s2531_s18 }
 0x5b1   :  { %v2351_v60 = vpop.eup %2350 }
 0x5b2   :  { %1537 = vperm.xlu2 %2192, %v2351_v60  }
 0x5b5   :  { %v1573_v31 = vpop.permute.xlu1 %1572 }
 0x5b6   :  { %v1658_v9 = vmul.f32 %v1573_v31, %v3413_v54 }
 0x5b8   :  { %1692 = vrot.lane.b32.xlu0 %v1658_v9, %s2531_s18 }
 0x5c0   :  { %1694 = vrot.lane.b32.xlu0 %v1659_v6, %s2531_s18 }
 0x5c5   :  { %v1583_v2 = vpop.permute.xlu1 %1582 }
 0x5c6   :  { %v1660_v37 = vmul.f32 %v1583_v2, %v3420_v19 }
 0x5c8   :  { %1696 = vrot.lane.b32.xlu0 %v1660_v37, %s2531_s18 }
 0x5cd   :  { %v1588_v20 = vpop.permute.xlu1 %1587 }
 0x5ce   :  { %v1661_v8 = vmul.f32 %v1588_v20, %v3424_v24 }
 0x5d0   :  { %1698 = vrot.lane.b32.xlu0 %v1661_v8, %s2531_s18 }
 0x5d5   :  { %v1593_v54 = vpop.permute.xlu1 %1592 }
 0x5d6   :  { %v1662_v41 = vmul.f32 %v1593_v54, %v3428_v30  ;;  %v3501_v30 = vpop.f32.mrf.mxu3 }
 0x5d7   :  { %2352 = vrcp.f32 %v3501_v30 }
 0x5d8   :  { %1700 = vrot.lane.b32.xlu0 %v1662_v41, %s2531_s18 }
 0x5dd   :  { %v1598_v56 = vpop.permute.xlu1 %1597  ;;  %v2353_v38 = vpop.eup %2352 }
 0x5de   :  { %v1663_v43 = vmul.f32 %v1598_v56, %v3432_v32  ;;  %v3506_v32 = vpop.f32.mrf.mxu3 }
 0x5df   :  { %2354 = vrcp.f32 %v3506_v32 }
 0x5e0   :  { %1702 = vrot.lane.b32.xlu0 %v1663_v43, %s2531_s18 }
 0x5e5   :  { %v1603_v19 = vpop.permute.xlu1 %1602  ;;  %v2355_v18 = vpop.eup %2354 }
 0x5e6   :  { %v1664_v25 = vmul.f32 %v1603_v19, %v3436_v40  ;;  %v3511_v42 = vpop.f32.mrf.mxu3 }
 0x5e7   :  { %2356 = vrcp.f32 %v3511_v42 }
 0x5e8   :  { %1704 = vrot.lane.b32.xlu0 %v1664_v25, %s2531_s18 }
 0x5ed   :  { %v2357_v21 = vpop.eup %2356 }
 0x5ee   :  { %v1608_v24 = vpop.permute.xlu1 %1607  ;;  %v3516_v44 = vpop.f32.mrf.mxu3 }
 0x5ef   :  { %v1665_v59 = vmul.f32 %v1608_v24, %v3442_v36  ;;  %2358 = vrcp.f32 %v3516_v44 }
 0x5f1   :  { %1706 = vrot.lane.b32.xlu0 %v1665_v59, %s2531_s18 }
 0x5f5   :  { %v2359_v46 = vpop.eup %2358 }
 0x5f6   :  { %v1613_v28 = vpop.permute.xlu1 %1612 }
 0x5f7   :  { %v1666_v34 = vmul.f32 %v1613_v28, %v3448_v61  ;;  %v1488_v61 = vpop.permute.xlu2 %1487 }
 0x5f8   :  { %v1641_v57 = vmul.f32 %v1488_v61, %v3389_v58 }
 0x5f9   :  { %1708 = vrot.lane.b32.xlu0 %v1666_v34, %s2531_s18 }
 0x5ff   :  { %v1618_v33 = vpop.permute.xlu1 %1617 }
 0x600   :  { %v1667_v40 = vmul.f32 %v1618_v33, %v3453_v11 }
 0x601   :  { %1542 = vperm.xlu0 %2191, %v2353_v38  }
 0x602   :  { %1710 = vrot.lane.b32.xlu1 %v1667_v40, %s2531_s18 }
 0x607   :  { %v1623_v36 = vpop.permute.xlu1 %1622 }
 0x608   :  { %v1668_v12 = vmul.f32 %v1623_v36, %v3457_v51  ;;  %v1493_v51 = vpop.permute.xlu2 %1492 }
 0x609   :  { %v1642_v3 = vmul.f32 %v1493_v51, %v3393_v39 }
 0x60a   :  { %1712 = vrot.lane.b32.xlu2 %v1668_v12, %s2531_s18  ;;  %1547 = vperm.xlu1 %2193, %v2355_v18  }
 0x60f   :  { %v1628_v14 = vpop.permute.xlu1 %1627 }
 0x610   :  { %v1669_v11 = vmul.f32 %v1628_v14, %v3463_v4  ;;  %v1498_v26 = vpop.permute.xlu2 %1497 }
 0x612   :  { %1552 = vperm.xlu2 %2192, %v2357_v21   ;;  %1714 = vrot.lane.b32.xlu0 %v1669_v11, %s2531_s18 }
 0x617   :  { %v1633_v55 = vpop.permute.xlu1 %1632 }
 0x618   :  { %v1670_v48 = vmul.f32 %v1633_v55, %v3469_v13  ;;  %v1503_v60 = vpop.permute.xlu2 %1502 }
 0x619   :  { %v1689_v22 = vpop.permute.xlu0 %1688  ;;  %v1644_v53 = vmul.f32 %v1503_v60, %v3402_v29 }
 0x61a   :  { %1557 = vperm.xlu0 %2191, %v2359_v46   ;;  %1716 = vrot.lane.b32.xlu1 %v1670_v48, %s2531_s18  ;;  %v1736_v4 = vsel %vm771_vm5, %v1640_v0, %v1689_v22 }
 0x61b   :  { %2005 = vmatmul.msk.f32.vlgmr.msrb.gmra.mxu3 %vm1758_vm6, %v1736_v4 }
 0x61f   :  { %v1638_v5 = vpop.permute.xlu1 %1637 }
 0x620   :  { %v1671_v1 = vmul.f32 %v1638_v5, %v3475_v16  ;;  %v1643_v16 = vmul.f32 %v1498_v26, %v3397_v63  ;;  %v1508_v9 = vpop.permute.xlu2 %1507  ;;  %v2360_v5 = vld [vmem:[#allocation2] sm:$0xff]  ;;  %v2361_v26 = vld [vmem:[#allocation2 + $0x8] sm:$0xff] }
 0x621   :  { %v1691_v13 = vpop.permute.xlu0 %1690  ;;  %v1645_v2 = vmul.f32 %v1508_v9, %v3439_v23 }
 0x622   :  { %1718 = vrot.lane.b32.xlu2 %v1671_v1, %s2531_s18  ;;  %v1737_v35 = vsel %vm771_vm5, %v1641_v57, %v1691_v13 }
 0x623   :  { %2006 = vmatmul.msk.f32.gmra.mxu3 %vm1758_vm6, %v1737_v35 }
 0x628   :  { %v1513_v39 = vpop.permute.xlu2 %1512 }
 0x629   :  { %v1646_v63 = vmul.f32 %v1513_v39, %v3445_v62 }
 0x62a   :  { %v1693_v17 = vpop.permute.xlu0 %1692 }
 0x62b   :  { %v1738_v10 = vsel %vm771_vm5, %v1642_v3, %v1693_v17  ;;  %v2362_v17 = vld [vmem:[#allocation2 + $0x10] sm:$0xff] }
 0x62c   :  { %2007 = vmatmul.msk.f32.gmra.mxu3 %vm1758_vm6, %v1738_v10 }
 0x630   :  { %v1518_v8 = vpop.permute.xlu2 %1517 }
 0x631   :  { %v1647_v29 = vmul.f32 %v1518_v8, %v3451_v45 }
 0x632   :  { %v1695_v31 = vpop.permute.xlu0 %1694 }
 0x633   :  { %v1739_v58 = vsel %vm771_vm5, %v1643_v16, %v1695_v31  ;;  %v2363_v31 = vld [vmem:[#allocation2 + $0x18] sm:$0xff] }
 0x634   :  { %2008 = vmatmul.msk.f32.gmra.mxu3 %vm1758_vm6, %v1739_v58 }
 0x638   :  { %v1523_v56 = vpop.permute.xlu2 %1522 }
 0x639   :  { %v1648_v23 = vmul.f32 %v1523_v56, %v3460_v15 }
 0x63a   :  { %v1697_v6 = vpop.permute.xlu0 %1696 }
 0x63b   :  { %v1740_v47 = vsel %vm771_vm5, %v1644_v53, %v1697_v6  ;;  %v2364_v6 = vld [vmem:[#allocation2 + $0x20] sm:$0xff] }
 0x63c   :  { %2009 = vmatmul.msk.f32.gmra.mxu3 %vm1758_vm6, %v1740_v47 }
 0x640   :  { %v1528_v62 = vpop.permute.xlu2 %1527 }
 0x641   :  { %v1649_v24 = vmul.f32 %v1528_v62, %v3466_v50 }
 0x642   :  { %v1699_v37 = vpop.permute.xlu0 %1698 }
 0x643   :  { %v1741_v20 = vsel %vm771_vm5, %v1645_v2, %v1699_v37  ;;  %v2365_v37 = vld [vmem:[#allocation2 + $0x28] sm:$0xff] }
 0x644   :  { %2010 = vmatmul.msk.f32.gmra.mxu3 %vm1758_vm6, %v1741_v20 }
 0x648   :  { %v1533_v45 = vpop.permute.xlu2 %1532 }
 0x649   :  { %v1650_v34 = vmul.f32 %v1533_v45, %v3472_v7 }
 0x64a   :  { %v1701_v54 = vpop.permute.xlu0 %1700 }
 0x64b   :  { %v1742_v41 = vsel %vm771_vm5, %v1646_v63, %v1701_v54  ;;  %v2366_v54 = vld [vmem:[#allocation2 + $0x30] sm:$0xff] }
 0x64c   :  { %2011 = vmatmul.msk.f32.gmra.mxu3 %vm1758_vm6, %v1742_v41 }
 0x650   :  { %v1538_v15 = vpop.permute.xlu2 %1537 }
 0x651   :  { %v1651_v40 = vmul.f32 %v1538_v15, %v3480_v27 }
 0x652   :  { %v1703_v43 = vpop.permute.xlu0 %1702 }
 0x653   :  { %v1743_v49 = vsel %vm771_vm5, %v1647_v29, %v1703_v43  ;;  %v2367_v43 = vld [vmem:[#allocation2 + $0x38] sm:$0xff] }
 0x654   :  { %2012 = vmatmul.msk.f32.gmra.mxu3 %vm1758_vm6, %v1743_v49 }
 0x65a   :  { %v1705_v19 = vpop.permute.xlu0 %1704 }
 0x65b   :  { %v1744_v25 = vsel %vm771_vm5, %v1648_v23, %v1705_v19 }
 0x65c   :  { %2013 = vmatmul.msk.f32.gmra.mxu3 %vm1758_vm6, %v1744_v25  ;;  %v2368_v25 = vld [vmem:[#allocation2 + $0x40] sm:$0xff] }
 0x663   :  { %v1707_v59 = vpop.permute.xlu0 %1706 }
 0x664   :  { %v1745_v28 = vsel %vm771_vm5, %v1649_v24, %v1707_v59  ;;  %v1713_v18 = vpop.permute.xlu2 %1712 }
 0x665   :  { %2014 = vmatmul.msk.f32.gmra.mxu3 %vm1758_vm6, %v1745_v28  ;;  %v2369_v28 = vld [vmem:[#allocation2 + $0x48] sm:$0xff] }
 0x66b   :  { %v1709_v33 = vpop.permute.xlu0 %1708 }
 0x66c   :  { %v1746_v38 = vsel %vm771_vm5, %v1650_v34, %v1709_v33  ;;  %v1553_v27 = vpop.permute.xlu2 %1552 }
 0x66d   :  { %2015 = vmatmul.msk.f32.gmra.mxu3 %vm1758_vm6, %v1746_v38  ;;  %v1654_v55 = vmul.f32 %v1553_v27, %v3511_v42  ;;  %v2370_v38 = vld [vmem:[#allocation2 + $0x50] sm:$0xff] }
 0x673   :  { %v1543_v50 = vpop.permute.xlu0 %1542 }
 0x674   :  { %v1711_v52 = vpop.permute.xlu1 %1710  ;;  %v1652_v12 = vmul.f32 %v1543_v50, %v3501_v30 }
 0x675   :  { %v1747_v36 = vsel %vm771_vm5, %v1651_v40, %v1711_v52 }
 0x676   :  { %2016 = vmatmul.msk.f32.gmra.mxu3 %vm1758_vm6, %v1747_v36  ;;  %v1748_v61 = vsel %vm771_vm5, %v1652_v12, %v1713_v18  ;;  %v2371_v36 = vld [vmem:[#allocation2 + $0x58] sm:$0xff] }
 0x67c   :  { %v1548_v7 = vpop.permute.xlu1 %1547  ;;  %v1719_v0 = vpop.permute.xlu2 %1718 }
 0x67d   :  { %v1653_v14 = vmul.f32 %v1548_v7, %v3506_v32  ;;  %v3576_v32 = vld [vmem:[%s3622_s6] ss:$0 sm:$0xff]  ;;  %s2541_s6 = smov [#allocation11]  }
 0x67e   :  { %2017 = vmatmul.msk.f32.gmra.mxu3 %vm1758_vm6, %v1748_v61  ;;  %v2372_v61 = vld [vmem:[#allocation2 + $0x60] sm:$0xff]  ;;  %s1908_s13 = sshll.u32 %s2541_s6, 4  ;;  %s1909_s13 = int_to_ptr.vmem [resolvable:$true] %s1908_s13 }
 0x684   :  { %v1715_v11 = vpop.permute.xlu0 %1714 }
 0x685   :  { %v1749_v21 = vsel %vm771_vm5, %v1653_v14, %v1715_v11 }
 0x686   :  { %2018 = vmatmul.msk.f32.gmra.mxu3 %vm1758_vm6, %v1749_v21  ;;  %v2373_v21 = vld [vmem:[#allocation2 + $0x68] sm:$0xff] }
 0x68c   :  { %v1717_v51 = vpop.permute.xlu1 %1716  ;;  %v1558_v30 = vpop.permute.xlu0 %1557 }
 0x68d   :  { %v1750_v48 = vsel %vm771_vm5, %v1654_v55, %v1717_v51  ;;  %v1655_v46 = vmul.f32 %v1558_v30, %v3516_v44 }
 0x68e   :  { %2019 = vmatmul.msk.f32.gmra.mxu3 %vm1758_vm6, %v1750_v48  ;;  %v2374_v48 = vld [vmem:[#allocation2 + $0x70] sm:$0xff] }
 0x68f   :  { %v1751_v22 = vsel %vm771_vm5, %v1655_v46, %v1719_v0 }
 0x696   :  { %2020 = vmatmul.msk.f32.gmra.mxu3 %vm1758_vm6, %v1751_v22  ;;  %v2375_v22 = vld [vmem:[#allocation2 + $0x78] sm:$0xff] }
 0x69e   :  { %v1824_v4 = vpop.f32.mrf.mxu3 }
 0x69f   :  { %v1825_v42 = vadd.f32 %v3576_v32, %v1824_v4 }
 0x6a1   :  { %v1872_v1 = vadd.f32 %v2360_v5, %v1825_v42 }
 0x6a3   :  { %1888 = vst.msk [vmem:[#allocation11] sm:$0xff] %vm122_vm0, %v1872_v1 }
 0x6a6   :  { %v1827_v57 = vpop.f32.mrf.mxu3 }
 0x6a7   :  { %v1828_v44 = vadd.f32 %v3576_v32, %v1827_v57 }
 0x6a9   :  { %v1873_v13 = vadd.f32 %v2361_v26, %v1828_v44 }
 0x6ab   :  { %1889 = vst.msk [vmem:[#allocation11 + $0x8] sm:$0xff] %vm122_vm0, %v1873_v13 }
 0x6af   :  { %v1830_v35 = vpop.f32.mrf.mxu3 }
 0x6b0   :  { %v1831_v3 = vadd.f32 %v3576_v32, %v1830_v35 }
 0x6b2   :  { %v1874_v10 = vadd.f32 %v2362_v17, %v1831_v3 }
 0x6b4   :  { %1890 = vst.msk [vmem:[#allocation11 + $0x10] sm:$0xff] %vm122_vm0, %v1874_v10 }
 0x6b7   :  { %v1833_v60 = vpop.f32.mrf.mxu3 }
 0x6b8   :  { %v1834_v16 = vadd.f32 %v3576_v32, %v1833_v60 }
 0x6ba   :  { %v1875_v58 = vadd.f32 %v2363_v31, %v1834_v16 }
 0x6bc   :  { %1891 = vst.msk [vmem:[#allocation11 + $0x18] sm:$0xff] %vm122_vm0, %v1875_v58 }
 0x6bf   :  { %v1836_v9 = vpop.f32.mrf.mxu3 }
 0x6c0   :  { %v1837_v53 = vadd.f32 %v3576_v32, %v1836_v9 }
 0x6c2   :  { %v1876_v47 = vadd.f32 %v2364_v6, %v1837_v53 }
 0x6c4   :  { %1892 = vst.msk [vmem:[#allocation11 + $0x20] sm:$0xff] %vm122_vm0, %v1876_v47 }
 0x6c7   :  { %v1839_v39 = vpop.f32.mrf.mxu3 }
 0x6c8   :  { %v1840_v2 = vadd.f32 %v3576_v32, %v1839_v39 }
 0x6ca   :  { %v1877_v20 = vadd.f32 %v2365_v37, %v1840_v2 }
 0x6cc   :  { %1893 = vst.msk [vmem:[#allocation11 + $0x28] sm:$0xff] %vm122_vm0, %v1877_v20 }
 0x6cf   :  { %v1842_v63 = vpop.f32.mrf.mxu3 }
 0x6d0   :  { %v1843_v8 = vadd.f32 %v3576_v32, %v1842_v63 }
 0x6d2   :  { %v1878_v41 = vadd.f32 %v2366_v54, %v1843_v8 }
 0x6d4   :  { %1894 = vst.msk [vmem:[#allocation11 + $0x30] sm:$0xff] %vm122_vm0, %v1878_v41 }
 0x6d7   :  { %v1845_v29 = vpop.f32.mrf.mxu3 }
 0x6d8   :  { %v1846_v56 = vadd.f32 %v3576_v32, %v1845_v29 }
 0x6da   :  { %v1879_v49 = vadd.f32 %v2367_v43, %v1846_v56 }
 0x6dc   :  { %1895 = vst.msk [vmem:[#allocation11 + $0x38] sm:$0xff] %vm122_vm0, %v1879_v49 }
 0x6df   :  { %v1848_v23 = vpop.f32.mrf.mxu3 }
 0x6e0   :  { %v1849_v19 = vadd.f32 %v3576_v32, %v1848_v23 }
 0x6e2   :  { %v1880_v62 = vadd.f32 %v2368_v25, %v1849_v19 }
 0x6e4   :  { %1896 = vst.msk [vmem:[#allocation11 + $0x40] sm:$0xff] %vm122_vm0, %v1880_v62 }
 0x6e8   :  { %v1851_v24 = vpop.f32.mrf.mxu3 }
 0x6e9   :  { %v1852_v59 = vadd.f32 %v3576_v32, %v1851_v24 }
 0x6eb   :  { %v1881_v45 = vadd.f32 %v2369_v28, %v1852_v59 }
 0x6ed   :  { %1897 = vst.msk [vmem:[#allocation11 + $0x48] sm:$0xff] %vm122_vm0, %v1881_v45 }
 0x6f0   :  { %v1854_v34 = vpop.f32.mrf.mxu3 }
 0x6f1   :  { %v1855_v33 = vadd.f32 %v3576_v32, %v1854_v34 }
 0x6f3   :  { %v1882_v15 = vadd.f32 %v2370_v38, %v1855_v33 }
 0x6f5   :  { %1898 = vst.msk [vmem:[#allocation11 + $0x50] sm:$0xff] %vm122_vm0, %v1882_v15 }
 0x6f9   :  { %v1857_v40 = vpop.f32.mrf.mxu3 }
 0x6fa   :  { %v1858_v52 = vadd.f32 %v3576_v32, %v1857_v40 }
 0x6fc   :  { %v1883_v50 = vadd.f32 %v2371_v36, %v1858_v52 }
 0x6fe   :  { %1899 = vst.msk [vmem:[#allocation11 + $0x58] sm:$0xff] %vm122_vm0, %v1883_v50 }
 0x701   :  { %v1860_v12 = vpop.f32.mrf.mxu3 }
 0x702   :  { %v1861_v18 = vadd.f32 %v3576_v32, %v1860_v12 }
 0x704   :  { %v1884_v7 = vadd.f32 %v2372_v61, %v1861_v18 }
 0x706   :  { %1900 = vst.msk [vmem:[#allocation11 + $0x60] sm:$0xff] %vm122_vm0, %v1884_v7 }
 0x709   :  { %v1863_v14 = vpop.f32.mrf.mxu3 }
 0x70a   :  { %v1864_v11 = vadd.f32 %v3576_v32, %v1863_v14 }
 0x70c   :  { %v1885_v27 = vadd.f32 %v2373_v21, %v1864_v11 }
 0x70e   :  { %1901 = vst.msk [vmem:[#allocation11 + $0x68] sm:$0xff] %vm122_vm0, %v1885_v27 }
 0x711   :  { %v1866_v55 = vpop.f32.mrf.mxu3 }
 0x712   :  { %v1867_v51 = vadd.f32 %v3576_v32, %v1866_v55 }
 0x714   :  { %v1886_v30 = vadd.f32 %v2374_v48, %v1867_v51 }
 0x716   :  { %1902 = vst.msk [vmem:[#allocation11 + $0x70] sm:$0xff] %vm122_vm0, %v1886_v30 }
 0x719   :  { %v1869_v46 = vpop.f32.mrf.mxu3 }
 0x71a   :  { %v1870_v0 = vadd.f32 %v3576_v32, %v1869_v46 }
 0x71c   :  { %v1887_v4 = vadd.f32 %v2375_v22, %v1870_v0 }
 0x71e   :  { %1903 = vst.msk [vmem:[#allocation11 + $0x78] sm:$0xff] %vm122_vm0, %v1887_v4 }
 0x71f   :  { %1916 = dma.vmem_to_hbm [thread:$0]  %s1909_s13, 2048, %s1911_s16, [#allocation4], %s2530_s1, %s2530_s1, %s2531_s18  }
 0x720   :  { %2526 = dma.done.wait [#allocation4], 2048  }
 0x721   :  { %2527 = vsyncadd [#allocation4], 4294965248 }
 0x722   :  { %1921 = vsyncpa [#allocation3], 1 }
 0x723   :  { %1922 = vsyncpa [#allocation6], 1 }
 0x724   :  { %1923 = vsyncpa [#allocation9], 1 }
 0x725   :  { %1924 = vsyncpa [#allocation4], 1 }

</bundles_post_ra>
